<compile_context>
chip_gen: v7x
topology: tpu7x:2x2x1
jax: 0.10.0
libtpu: 0.0.40
codegen_flags: <defaults>
</compile_context>

<pallas_src>
import jax
import jax.numpy as jnp
from jax import lax
from jax.experimental import pallas as pl
from jax.experimental.pallas import tpu as pltpu


# ---------------------------------------------------------------------------
# In-kernel helpers
# ---------------------------------------------------------------------------
def _shift_down(v):
    """out[l] = v[l-1], out[0] = 0   (left zero-pad of a conv window)."""
    r = pltpu.roll(v, shift=1, axis=0)
    idx = lax.broadcasted_iota(jnp.int32, v.shape, 0)
    return jnp.where(idx == 0, 0.0, r)


def _shift_up(v):
    """out[l] = v[l+1], out[L-1] = 0 (right zero-pad of a conv window)."""
    L = v.shape[0]
    r = pltpu.roll(v, shift=L - 1, axis=0)
    idx = lax.broadcasted_iota(jnp.int32, v.shape, 0)
    return jnp.where(idx == L - 1, 0.0, r)


def _conv3_bn(v, w_ref, scale, shift):
    """conv3x1 (stride 1, pad 1) + folded BN.  v: (L, Cin) f32, w_ref: (3, Cin, Cout) bf16."""
    acc = jnp.dot(_shift_down(v).astype(jnp.bfloat16), w_ref[0],
                  preferred_element_type=jnp.float32)
    acc += jnp.dot(v.astype(jnp.bfloat16), w_ref[1],
                   preferred_element_type=jnp.float32)
    acc += jnp.dot(_shift_up(v).astype(jnp.bfloat16), w_ref[2],
                   preferred_element_type=jnp.float32)
    return acc * scale + shift


def _const_spec(shape):
    zeros = (0,) * len(shape)
    return pl.BlockSpec(shape, lambda n, _z=zeros: _z)


# ---------------------------------------------------------------------------
# The single fused kernel
# ---------------------------------------------------------------------------
def _make_fused_call(N, L, C1, C2, num_classes):
    Lm = L // 4          # length after stem (stride-2 conv + stride-2 maxpool)
    L2 = Lm // 2         # length after the stride-2 ResBlock

    def kernel(taps_ref, w0_ref, s0_ref, b0_ref,
               w11_ref, s11_ref, b11_ref, w12_ref, s12_ref, b12_ref,
               w21_ref, s21_ref, b21_ref, wd_ref, sd_ref, bd_ref,
               w22_ref, s22_ref, b22_ref,
               fcw_ref, fcb_ref,
               logits_ref, feat_ref):
        f32, bf16 = jnp.float32, jnp.bfloat16

        # ---- stem: Conv1d(1, C1, 7, s2, p3) + BN + ReLU + MaxPool1d(3, 2, 1) ----
        # taps_ref holds the (2*Lm, 8) im2col of the zero-padded input signal:
        #   rows [0, Lm)    -> taps of conv outputs c[2j]   (even stream)
        #   rows [Lm, 2*Lm) -> taps of conv outputs c[2j+1] (odd  stream)
        c = jnp.dot(taps_ref[...], w0_ref[...], preferred_element_type=f32)   # (2*Lm, C1)
        c = jnp.maximum(c * s0_ref[...] + b0_ref[...], 0.0)
        ce = c[0:Lm, :]             # c[2j]
        co = c[Lm:2 * Lm, :]        # c[2j+1]
        co_m1 = _shift_down(co)     # c[2j-1]; 0-pad safe: values are post-ReLU >= 0
        y0 = jnp.maximum(jnp.maximum(ce, co), co_m1)                          # (Lm, C1)

        # ---- ResBlock 1 (stride 1, identity shortcut) ----
        h1 = jnp.maximum(_conv3_bn(y0, w11_ref, s11_ref[...], b11_ref[...]), 0.0)
        y1 = jnp.maximum(_conv3_bn(h1, w12_ref, s12_ref[...], b12_ref[...]) + y0, 0.0)

        # ---- ResBlock 2 (stride 2, 1x1 stride-2 conv downsample) ----
        # Even/odd row gather as tiny selection matmuls on the idle MXU.
        li = lax.broadcasted_iota(jnp.int32, (L2, Lm), 0)
        ri = lax.broadcasted_iota(jnp.int32, (L2, Lm), 1)
        sel_e = jnp.where(ri == 2 * li, 1.0, 0.0).astype(bf16)       # picks y1[2l]
        sel_o = jnp.where(ri == 2 * li + 1, 1.0, 0.0).astype(bf16)   # picks y1[2l+1]
        sel_m = jnp.where(ri == 2 * li - 1, 1.0, 0.0).astype(bf16)   # picks y1[2l-1] (row 0 -> 0)
        y1b = y1.astype(bf16)
        xe = jnp.dot(sel_e, y1b, preferred_element_type=f32).astype(bf16)   # (L2, C1)
        xo = jnp.dot(sel_o, y1b, preferred_element_type=f32).astype(bf16)
        xm = jnp.dot(sel_m, y1b, preferred_element_type=f32).astype(bf16)
        # conv1 (k=3, stride 2, pad 1): out[l] = x[2l-1]@w0 + x[2l]@w1 + x[2l+1]@w2
        acc = jnp.dot(xm, w21_ref[0], preferred_element_type=f32)
        acc += jnp.dot(xe, w21_ref[1], preferred_element_type=f32)
        acc += jnp.dot(xo, w21_ref[2], preferred_element_type=f32)
        h2 = jnp.maximum(acc * s21_ref[...] + b21_ref[...], 0.0)             # (L2, C2)
        # downsample shortcut: 1x1 stride-2 conv + BN on x[2l] = xe
        sc = jnp.dot(xe, wd_ref[...], preferred_element_type=f32) * sd_ref[...] + bd_ref[...]
        y2 = jnp.maximum(_conv3_bn(h2, w22_ref, s22_ref[...], b22_ref[...]) + sc, 0.0)

        # ---- head: AdaptiveAvgPool1d(1) + Linear ----
        feat_ref[...] = jnp.mean(y2, axis=0, keepdims=True)                  # (1, C2)
        p = jnp.dot(y2, fcw_ref[...], preferred_element_type=f32)            # (L2, classes)
        logits_ref[...] = jnp.mean(p, axis=0, keepdims=True) + fcb_ref[...]

    vec1 = _const_spec((1, C1))
    vec2 = _const_spec((1, C2))
    in_specs = [
        pl.BlockSpec((None, 2 * Lm, 8), lambda n: (n, 0, 0)),    # stem im2col taps
        _const_spec((8, C1)), vec1, vec1,                        # stem conv w (7+1 zero row), bn1
        _const_spec((3, C1, C1)), vec1, vec1,                    # block1 conv1 w, bn1
        _const_spec((3, C1, C1)), vec1, vec1,                    # block1 conv2 w, bn2
        _const_spec((3, C1, C2)), vec2, vec2,                    # block2 conv1 w, bn1
        _const_spec((C1, C2)), vec2, vec2,                       # block2 downsample w, bn
        _const_spec((3, C2, C2)), vec2, vec2,                    # block2 conv2 w, bn2
        _const_spec((C2, num_classes)), _const_spec((1, num_classes)),   # fc
    ]
    out_specs = (
        pl.BlockSpec((None, 1, num_classes), lambda n: (n, 0, 0)),
        pl.BlockSpec((None, 1, C2), lambda n: (n, 0, 0)),
    )
    return pl.pallas_call(
        kernel,
        grid=(N,),
        in_specs=in_specs,
        out_specs=out_specs,
        out_shape=(
            jax.ShapeDtypeStruct((N, 1, num_classes), jnp.float32),
            jax.ShapeDtypeStruct((N, 1, C2), jnp.float32),
        ),
        compiler_params=pltpu.CompilerParams(dimension_semantics=("parallel",)),
    )


# ---------------------------------------------------------------------------
# Host-side (one-time) stem im2col prep — the only wrapper-side data movement.
# ---------------------------------------------------------------------------
def _stem_im2col(x_nl):
    """(N, L) f32 -> (N, 2*(L//4), 8) f32 im2col of Conv1d(k=7, s=2, p=3).

    Row order per sample: even conv-output positions first, then odd, so the
    in-kernel maxpool streams are contiguous sublane slices.
    """
    N, L = x_nl.shape
    Lc = L // 2
    xp = jnp.pad(x_nl, ((0, 0), (3, 3)))                                    # length L + 6
    taps = jnp.stack([xp[:, k:k + 2 * Lc - 1:2] for k in range(7)], axis=-1)  # (N, Lc, 7)
    taps = jnp.pad(taps, ((0, 0), (0, 0), (0, 1)))                          # pad K: 7 -> 8
    return jnp.concatenate([taps[:, 0::2, :], taps[:, 1::2, :]], axis=1)    # (N, 2*Lm, 8)


# ---------------------------------------------------------------------------
# Parameters (inference-mode BN folded to scale/shift)
# ---------------------------------------------------------------------------
def _bn_fold(gamma, beta, mean, var, eps=1e-5):
    scale = gamma / jnp.sqrt(var + eps)
    shift = beta - mean * scale
    return scale, shift


def _bn_params(c):
    # BatchNorm1d init: weight=1, bias=0; running stats: mean=0, var=1.
    return _bn_fold(jnp.ones((c,), jnp.float32), jnp.zeros((c,), jnp.float32),
                    jnp.zeros((c,), jnp.float32), jnp.ones((c,), jnp.float32))


def _kaiming_conv(key, k, cin, cout):
    fan_out = cout * k                       # kaiming_normal_(mode='fan_out') for Conv1d
    std = (2.0 / fan_out) ** 0.5
    return jax.random.normal(key, (k, cin, cout), jnp.float32) * std


def init_params(key, blocks=(1, 1), class_num=10):
    cnt = [0]

    def nk():
        cnt[0] += 1
        return jax.random.fold_in(key, cnt[0])

    params = {"conv1_w": _kaiming_conv(nk(), 7, 1, 64), "bn1": _bn_params(64)}
    inplanes = 64
    stride_list = [1, 2, 2, 2]
    planes_list = [64, 128, 256, 512]
    layers = []
    for i, bnum in enumerate(blocks):
        planes, lstride = planes_list[i], stride_list[i]
        blks = []
        for j in range(bnum):
            s = lstride if j == 0 else 1
            blk = {"stride": s,
                   "conv1_w": _kaiming_conv(nk(), 3, inplanes, planes),
                   "bn1": _bn_params(planes),
                   "conv2_w": _kaiming_conv(nk(), 3, planes, planes),
                   "bn2": _bn_params(planes)}
            if s != 1 or inplanes != planes:
                blk["ds_w"] = _kaiming_conv(nk(), 1, inplanes, planes)
                blk["ds_bn"] = _bn_params(planes)
            inplanes = planes
            blks.append(blk)
        layers.append(blks)
    params["layers"] = layers

    fea_dim = planes_list[len(blocks) - 1]   # bottleneck = nn.Identity()
    bound = 1.0 / (fea_dim ** 0.5)           # nn.Linear default init
    params["fc_w"] = jax.random.uniform(nk(), (fea_dim, class_num), jnp.float32,
                                        minval=-bound, maxval=bound)
    params["fc_b"] = jax.random.uniform(nk(), (class_num,), jnp.float32,
                                        minval=-bound, maxval=bound)
    return params


# ---------------------------------------------------------------------------
# Forward pass (single fused pallas_call)
# ---------------------------------------------------------------------------
def _row(v):
    return v.reshape(1, -1).astype(jnp.float32)


def forward(params, x_ncl):
    assert x_ncl.shape[1] == 1, "the input dim should be 1"
    N, _, L = x_ncl.shape
    assert L % 32 == 0, "fused kernel expects the input length to be a multiple of 32"

    layers = params["layers"]
    # TODO(synk): the fused kernel is specialized to cfg blocks=(1, 1) (one stride-1
    # ResBlock 64->64 then one stride-2 ResBlock 64->128); other block configs would
    # need additional fused stages.
    assert len(layers) == 2 and len(layers[0]) == 1 and len(layers[1]) == 1
    b1, b2 = layers[0][0], layers[1][0]
    assert b1["stride"] == 1 and "ds_w" not in b1
    assert b2["stride"] == 2 and "ds_w" in b2

    C1 = params["conv1_w"].shape[2]
    C2 = b2["conv1_w"].shape[2]
    ncls = params["fc_w"].shape[1]

    taps = _stem_im2col(x_ncl[:, 0, :].astype(jnp.float32))                     # (N, 2*Lm, 8)
    w0 = jnp.pad(params["conv1_w"].reshape(7, C1), ((0, 1), (0, 0))).astype(jnp.float32)

    args = (
        taps, w0, _row(params["bn1"][0]), _row(params["bn1"][1]),
        b1["conv1_w"].astype(jnp.bfloat16), _row(b1["bn1"][0]), _row(b1["bn1"][1]),
        b1["conv2_w"].astype(jnp.bfloat16), _row(b1["bn2"][0]), _row(b1["bn2"][1]),
        b2["conv1_w"].astype(jnp.bfloat16), _row(b2["bn1"][0]), _row(b2["bn1"][1]),
        b2["ds_w"][0].astype(jnp.bfloat16), _row(b2["ds_bn"][0]), _row(b2["ds_bn"][1]),
        b2["conv2_w"].astype(jnp.bfloat16), _row(b2["bn2"][0]), _row(b2["bn2"][1]),
        params["fc_w"].astype(jnp.float32), params["fc_b"].reshape(1, -1).astype(jnp.float32),
    )
    logits, feat = _make_fused_call(N, L, C1, C2, ncls)(*args)
    return logits.reshape(N, ncls), feat.reshape(N, C2)


# ---------------------------------------------------------------------------
if __name__ == "__main__":
    key = jax.random.PRNGKey(0)
    blocks, class_num = (1, 1), 10           # cfg.blocks, cfg.class_num ; cfg.bottleneck = False
    params = init_params(key, blocks=blocks, class_num=class_num)

    # input: (batch=2, channels=1, length=64) as in PyTorch NCL
    x = jax.random.normal(jax.random.fold_in(key, 12345), (2, 1, 64), jnp.float32)

    fwd = jax.jit(lambda inp: forward(params, inp))
    logits, feats = fwd(x)
    jax.block_until_ready((logits, feats))
    assert logits.shape == (2, class_num)
    assert feats.shape == (2, 128)
    assert bool(jnp.all(jnp.isfinite(logits))) and bool(jnp.all(jnp.isfinite(feats)))
    print("KERNEL_OK")
</pallas_src>

<mosaic_0001>
module attributes {stable_mosaic.version = 11 : i64} {
  func.func @kernel(%arg0: i32, %arg1: memref<1x32x8xf32, #tpu.memory_space<vmem>>, %arg2: memref<8x64xf32, #tpu.memory_space<vmem>>, %arg3: memref<1x64xf32, #tpu.memory_space<vmem>>, %arg4: memref<1x64xf32, #tpu.memory_space<vmem>>, %arg5: memref<3x64x64xbf16, #tpu.memory_space<vmem>>, %arg6: memref<1x64xf32, #tpu.memory_space<vmem>>, %arg7: memref<1x64xf32, #tpu.memory_space<vmem>>, %arg8: memref<3x64x64xbf16, #tpu.memory_space<vmem>>, %arg9: memref<1x64xf32, #tpu.memory_space<vmem>>, %arg10: memref<1x64xf32, #tpu.memory_space<vmem>>, %arg11: memref<3x64x128xbf16, #tpu.memory_space<vmem>>, %arg12: memref<1x128xf32, #tpu.memory_space<vmem>>, %arg13: memref<1x128xf32, #tpu.memory_space<vmem>>, %arg14: memref<64x128xbf16, #tpu.memory_space<vmem>>, %arg15: memref<1x128xf32, #tpu.memory_space<vmem>>, %arg16: memref<1x128xf32, #tpu.memory_space<vmem>>, %arg17: memref<3x128x128xbf16, #tpu.memory_space<vmem>>, %arg18: memref<1x128xf32, #tpu.memory_space<vmem>>, %arg19: memref<1x128xf32, #tpu.memory_space<vmem>>, %arg20: memref<128x10xf32, #tpu.memory_space<vmem>>, %arg21: memref<1x10xf32, #tpu.memory_space<vmem>>, %arg22: memref<1x1x10xf32, #tpu.memory_space<vmem>>, %arg23: memref<1x1x128xf32, #tpu.memory_space<vmem>>) attributes {dimension_semantics = [#tpu.dimension_semantics<parallel>], iteration_bounds = array<i64: 2>, scalar_prefetch = 0 : i64, scratch_operands = 0 : i64, tpu.core_type = #tpu.core_type<tc>, window_params = [{transform_indices = @transform_0, window_bounds = array<i64: 1, 32, 8>}, {pipeline_mode = #tpu.pipeline_mode<synchronous>, transform_indices = @transform_1, window_bounds = array<i64: 8, 64>}, {pipeline_mode = #tpu.pipeline_mode<synchronous>, transform_indices = @transform_2, window_bounds = array<i64: 1, 64>}, {pipeline_mode = #tpu.pipeline_mode<synchronous>, transform_indices = @transform_3, window_bounds = array<i64: 1, 64>}, {pipeline_mode = #tpu.pipeline_mode<synchronous>, transform_indices = @transform_4, window_bounds = array<i64: 3, 64, 64>}, {pipeline_mode = #tpu.pipeline_mode<synchronous>, transform_indices = @transform_5, window_bounds = array<i64: 1, 64>}, {pipeline_mode = #tpu.pipeline_mode<synchronous>, transform_indices = @transform_6, window_bounds = array<i64: 1, 64>}, {pipeline_mode = #tpu.pipeline_mode<synchronous>, transform_indices = @transform_7, window_bounds = array<i64: 3, 64, 64>}, {pipeline_mode = #tpu.pipeline_mode<synchronous>, transform_indices = @transform_8, window_bounds = array<i64: 1, 64>}, {pipeline_mode = #tpu.pipeline_mode<synchronous>, transform_indices = @transform_9, window_bounds = array<i64: 1, 64>}, {pipeline_mode = #tpu.pipeline_mode<synchronous>, transform_indices = @transform_10, window_bounds = array<i64: 3, 64, 128>}, {pipeline_mode = #tpu.pipeline_mode<synchronous>, transform_indices = @transform_11, window_bounds = array<i64: 1, 128>}, {pipeline_mode = #tpu.pipeline_mode<synchronous>, transform_indices = @transform_12, window_bounds = array<i64: 1, 128>}, {pipeline_mode = #tpu.pipeline_mode<synchronous>, transform_indices = @transform_13, window_bounds = array<i64: 64, 128>}, {pipeline_mode = #tpu.pipeline_mode<synchronous>, transform_indices = @transform_14, window_bounds = array<i64: 1, 128>}, {pipeline_mode = #tpu.pipeline_mode<synchronous>, transform_indices = @transform_15, window_bounds = array<i64: 1, 128>}, {pipeline_mode = #tpu.pipeline_mode<synchronous>, transform_indices = @transform_16, window_bounds = array<i64: 3, 128, 128>}, {pipeline_mode = #tpu.pipeline_mode<synchronous>, transform_indices = @transform_17, window_bounds = array<i64: 1, 128>}, {pipeline_mode = #tpu.pipeline_mode<synchronous>, transform_indices = @transform_18, window_bounds = array<i64: 1, 128>}, {pipeline_mode = #tpu.pipeline_mode<synchronous>, transform_indices = @transform_19, window_bounds = array<i64: 128, 10>}, {pipeline_mode = #tpu.pipeline_mode<synchronous>, transform_indices = @transform_20, window_bounds = array<i64: 1, 10>}, {transform_indices = @transform_21, window_bounds = array<i64: 1, 1, 10>}, {transform_indices = @transform_22, window_bounds = array<i64: 1, 1, 128>}]} {
    %c0 = arith.constant 0 : index
    %c0_0 = arith.constant 0 : index
    %c0_1 = arith.constant 0 : index
    %0 = vector.load %arg1[%c0, %c0_0, %c0_1] : memref<1x32x8xf32, #tpu.memory_space<vmem>>, vector<1x32x8xf32>
    %1 = vector.shape_cast %0 : vector<1x32x8xf32> to vector<32x8xf32>
    %c0_2 = arith.constant 0 : index
    %c0_3 = arith.constant 0 : index
    %2 = vector.load %arg2[%c0_2, %c0_3] : memref<8x64xf32, #tpu.memory_space<vmem>>, vector<8x64xf32>
    %cst = arith.constant dense<0.000000e+00> : vector<32x64xf32>
    %3 = tpu.matmul %1, %2, %cst {dimension_numbers = #tpu.dot_dimension_numbers<[1], [0], [0], [1], [0, 0, 1, 1], [], []>} : vector<32x8xf32>, vector<8x64xf32>, vector<32x64xf32> -> vector<32x64xf32>
    %c0_4 = arith.constant 0 : index
    %c0_5 = arith.constant 0 : index
    %4 = vector.load %arg3[%c0_4, %c0_5] : memref<1x64xf32, #tpu.memory_space<vmem>>, vector<1x64xf32>
    %5 = vector.broadcast %4 : vector<1x64xf32> to vector<32x64xf32>
    %6 = arith.mulf %3, %5 : vector<32x64xf32>
    %c0_6 = arith.constant 0 : index
    %c0_7 = arith.constant 0 : index
    %7 = vector.load %arg4[%c0_6, %c0_7] : memref<1x64xf32, #tpu.memory_space<vmem>>, vector<1x64xf32>
    %8 = vector.broadcast %7 : vector<1x64xf32> to vector<32x64xf32>
    %9 = arith.addf %6, %8 : vector<32x64xf32>
    %cst_8 = arith.constant 0.000000e+00 : f32
    %10 = vector.broadcast %cst_8 : f32 to vector<32x64xf32>
    %11 = arith.maximumf %9, %10 : vector<32x64xf32>
    %12 = vector.extract_strided_slice %11 {offsets = [0, 0], sizes = [16, 64], strides = [1, 1]} : vector<32x64xf32> to vector<16x64xf32>
    %13 = vector.extract_strided_slice %11 {offsets = [16, 0], sizes = [16, 64], strides = [1, 1]} : vector<32x64xf32> to vector<16x64xf32>
    %c1_i32 = arith.constant 1 : i32
    %14 = tpu.dynamic_rotate %13 by %c1_i32 dim 0 : vector<16x64xf32>, i32 -> vector<16x64xf32>
    %15 = tpu.iota {dimensions = array<i32: 0>} : vector<16x64xi32>
    %c0_i32 = arith.constant 0 : i32
    %16 = vector.broadcast %c0_i32 : i32 to vector<16x64xi32>
    %17 = arith.cmpi eq, %15, %16 : vector<16x64xi32>
    %cst_9 = arith.constant 0.000000e+00 : f32
    %18 = vector.broadcast %cst_9 : f32 to vector<16x64xf32>
    %19 = arith.select %17, %18, %14 : vector<16x64xi1>, vector<16x64xf32>
    %20 = arith.maximumf %12, %13 : vector<16x64xf32>
    %21 = arith.maximumf %20, %19 : vector<16x64xf32>
    %c0_10 = arith.constant 0 : index
    %c0_11 = arith.constant 0 : index
    %22 = vector.load %arg6[%c0_10, %c0_11] : memref<1x64xf32, #tpu.memory_space<vmem>>, vector<1x64xf32>
    %c0_12 = arith.constant 0 : index
    %c0_13 = arith.constant 0 : index
    %23 = vector.load %arg7[%c0_12, %c0_13] : memref<1x64xf32, #tpu.memory_space<vmem>>, vector<1x64xf32>
    %c1_i32_14 = arith.constant 1 : i32
    %24 = tpu.dynamic_rotate %21 by %c1_i32_14 dim 0 : vector<16x64xf32>, i32 -> vector<16x64xf32>
    %25 = tpu.iota {dimensions = array<i32: 0>} : vector<16x64xi32>
    %c0_i32_15 = arith.constant 0 : i32
    %26 = vector.broadcast %c0_i32_15 : i32 to vector<16x64xi32>
    %27 = arith.cmpi eq, %25, %26 : vector<16x64xi32>
    %cst_16 = arith.constant 0.000000e+00 : f32
    %28 = vector.broadcast %cst_16 : f32 to vector<16x64xf32>
    %29 = arith.select %27, %28, %24 : vector<16x64xi1>, vector<16x64xf32>
    %30 = arith.truncf %29 : vector<16x64xf32> to vector<16x64xbf16>
    %c0_17 = arith.constant 0 : index
    %c0_18 = arith.constant 0 : index
    %c0_19 = arith.constant 0 : index
    %31 = vector.load %arg5[%c0_17, %c0_18, %c0_19] : memref<3x64x64xbf16, #tpu.memory_space<vmem>>, vector<1x64x64xbf16>
    %32 = vector.shape_cast %31 : vector<1x64x64xbf16> to vector<64x64xbf16>
    %cst_20 = arith.constant dense<0.000000e+00> : vector<16x64xf32>
    %33 = tpu.matmul %30, %32, %cst_20 {dimension_numbers = #tpu.dot_dimension_numbers<[1], [0], [0], [1], [0, 0, 1, 1], [], []>} : vector<16x64xbf16>, vector<64x64xbf16>, vector<16x64xf32> -> vector<16x64xf32>
    %34 = arith.truncf %21 : vector<16x64xf32> to vector<16x64xbf16>
    %c1 = arith.constant 1 : index
    %c0_21 = arith.constant 0 : index
    %c0_22 = arith.constant 0 : index
    %35 = vector.load %arg5[%c1, %c0_21, %c0_22] : memref<3x64x64xbf16, #tpu.memory_space<vmem>>, vector<1x64x64xbf16>
    %36 = vector.shape_cast %35 : vector<1x64x64xbf16> to vector<64x64xbf16>
    %cst_23 = arith.constant dense<0.000000e+00> : vector<16x64xf32>
    %37 = tpu.matmul %34, %36, %cst_23 {dimension_numbers = #tpu.dot_dimension_numbers<[1], [0], [0], [1], [0, 0, 1, 1], [], []>} : vector<16x64xbf16>, vector<64x64xbf16>, vector<16x64xf32> -> vector<16x64xf32>
    %38 = arith.addf %33, %37 : vector<16x64xf32>
    %c15_i32 = arith.constant 15 : i32
    %39 = tpu.dynamic_rotate %21 by %c15_i32 dim 0 : vector<16x64xf32>, i32 -> vector<16x64xf32>
    %40 = tpu.iota {dimensions = array<i32: 0>} : vector<16x64xi32>
    %c15_i32_24 = arith.constant 15 : i32
    %41 = vector.broadcast %c15_i32_24 : i32 to vector<16x64xi32>
    %42 = arith.cmpi eq, %40, %41 : vector<16x64xi32>
    %cst_25 = arith.constant 0.000000e+00 : f32
    %43 = vector.broadcast %cst_25 : f32 to vector<16x64xf32>
    %44 = arith.select %42, %43, %39 : vector<16x64xi1>, vector<16x64xf32>
    %45 = arith.truncf %44 : vector<16x64xf32> to vector<16x64xbf16>
    %c2 = arith.constant 2 : index
    %c0_26 = arith.constant 0 : index
    %c0_27 = arith.constant 0 : index
    %46 = vector.load %arg5[%c2, %c0_26, %c0_27] : memref<3x64x64xbf16, #tpu.memory_space<vmem>>, vector<1x64x64xbf16>
    %47 = vector.shape_cast %46 : vector<1x64x64xbf16> to vector<64x64xbf16>
    %cst_28 = arith.constant dense<0.000000e+00> : vector<16x64xf32>
    %48 = tpu.matmul %45, %47, %cst_28 {dimension_numbers = #tpu.dot_dimension_numbers<[1], [0], [0], [1], [0, 0, 1, 1], [], []>} : vector<16x64xbf16>, vector<64x64xbf16>, vector<16x64xf32> -> vector<16x64xf32>
    %49 = arith.addf %38, %48 : vector<16x64xf32>
    %50 = vector.broadcast %22 : vector<1x64xf32> to vector<16x64xf32>
    %51 = arith.mulf %49, %50 : vector<16x64xf32>
    %52 = vector.broadcast %23 : vector<1x64xf32> to vector<16x64xf32>
    %53 = arith.addf %51, %52 : vector<16x64xf32>
    %cst_29 = arith.constant 0.000000e+00 : f32
    %54 = vector.broadcast %cst_29 : f32 to vector<16x64xf32>
    %55 = arith.maximumf %53, %54 : vector<16x64xf32>
    %c0_30 = arith.constant 0 : index
    %c0_31 = arith.constant 0 : index
    %56 = vector.load %arg9[%c0_30, %c0_31] : memref<1x64xf32, #tpu.memory_space<vmem>>, vector<1x64xf32>
    %c0_32 = arith.constant 0 : index
    %c0_33 = arith.constant 0 : index
    %57 = vector.load %arg10[%c0_32, %c0_33] : memref<1x64xf32, #tpu.memory_space<vmem>>, vector<1x64xf32>
    %c1_i32_34 = arith.constant 1 : i32
    %58 = tpu.dynamic_rotate %55 by %c1_i32_34 dim 0 : vector<16x64xf32>, i32 -> vector<16x64xf32>
    %59 = tpu.iota {dimensions = array<i32: 0>} : vector<16x64xi32>
    %c0_i32_35 = arith.constant 0 : i32
    %60 = vector.broadcast %c0_i32_35 : i32 to vector<16x64xi32>
    %61 = arith.cmpi eq, %59, %60 : vector<16x64xi32>
    %cst_36 = arith.constant 0.000000e+00 : f32
    %62 = vector.broadcast %cst_36 : f32 to vector<16x64xf32>
    %63 = arith.select %61, %62, %58 : vector<16x64xi1>, vector<16x64xf32>
    %64 = arith.truncf %63 : vector<16x64xf32> to vector<16x64xbf16>
    %c0_37 = arith.constant 0 : index
    %c0_38 = arith.constant 0 : index
    %c0_39 = arith.constant 0 : index
    %65 = vector.load %arg8[%c0_37, %c0_38, %c0_39] : memref<3x64x64xbf16, #tpu.memory_space<vmem>>, vector<1x64x64xbf16>
    %66 = vector.shape_cast %65 : vector<1x64x64xbf16> to vector<64x64xbf16>
    %cst_40 = arith.constant dense<0.000000e+00> : vector<16x64xf32>
    %67 = tpu.matmul %64, %66, %cst_40 {dimension_numbers = #tpu.dot_dimension_numbers<[1], [0], [0], [1], [0, 0, 1, 1], [], []>} : vector<16x64xbf16>, vector<64x64xbf16>, vector<16x64xf32> -> vector<16x64xf32>
    %68 = arith.truncf %55 : vector<16x64xf32> to vector<16x64xbf16>
    %c1_41 = arith.constant 1 : index
    %c0_42 = arith.constant 0 : index
    %c0_43 = arith.constant 0 : index
    %69 = vector.load %arg8[%c1_41, %c0_42, %c0_43] : memref<3x64x64xbf16, #tpu.memory_space<vmem>>, vector<1x64x64xbf16>
    %70 = vector.shape_cast %69 : vector<1x64x64xbf16> to vector<64x64xbf16>
    %cst_44 = arith.constant dense<0.000000e+00> : vector<16x64xf32>
    %71 = tpu.matmul %68, %70, %cst_44 {dimension_numbers = #tpu.dot_dimension_numbers<[1], [0], [0], [1], [0, 0, 1, 1], [], []>} : vector<16x64xbf16>, vector<64x64xbf16>, vector<16x64xf32> -> vector<16x64xf32>
    %72 = arith.addf %67, %71 : vector<16x64xf32>
    %c15_i32_45 = arith.constant 15 : i32
    %73 = tpu.dynamic_rotate %55 by %c15_i32_45 dim 0 : vector<16x64xf32>, i32 -> vector<16x64xf32>
    %74 = tpu.iota {dimensions = array<i32: 0>} : vector<16x64xi32>
    %c15_i32_46 = arith.constant 15 : i32
    %75 = vector.broadcast %c15_i32_46 : i32 to vector<16x64xi32>
    %76 = arith.cmpi eq, %74, %75 : vector<16x64xi32>
    %cst_47 = arith.constant 0.000000e+00 : f32
    %77 = vector.broadcast %cst_47 : f32 to vector<16x64xf32>
    %78 = arith.select %76, %77, %73 : vector<16x64xi1>, vector<16x64xf32>
    %79 = arith.truncf %78 : vector<16x64xf32> to vector<16x64xbf16>
    %c2_48 = arith.constant 2 : index
    %c0_49 = arith.constant 0 : index
    %c0_50 = arith.constant 0 : index
    %80 = vector.load %arg8[%c2_48, %c0_49, %c0_50] : memref<3x64x64xbf16, #tpu.memory_space<vmem>>, vector<1x64x64xbf16>
    %81 = vector.shape_cast %80 : vector<1x64x64xbf16> to vector<64x64xbf16>
    %cst_51 = arith.constant dense<0.000000e+00> : vector<16x64xf32>
    %82 = tpu.matmul %79, %81, %cst_51 {dimension_numbers = #tpu.dot_dimension_numbers<[1], [0], [0], [1], [0, 0, 1, 1], [], []>} : vector<16x64xbf16>, vector<64x64xbf16>, vector<16x64xf32> -> vector<16x64xf32>
    %83 = arith.addf %72, %82 : vector<16x64xf32>
    %84 = vector.broadcast %56 : vector<1x64xf32> to vector<16x64xf32>
    %85 = arith.mulf %83, %84 : vector<16x64xf32>
    %86 = vector.broadcast %57 : vector<1x64xf32> to vector<16x64xf32>
    %87 = arith.addf %85, %86 : vector<16x64xf32>
    %88 = arith.addf %87, %21 : vector<16x64xf32>
    %cst_52 = arith.constant 0.000000e+00 : f32
    %89 = vector.broadcast %cst_52 : f32 to vector<16x64xf32>
    %90 = arith.maximumf %88, %89 : vector<16x64xf32>
    %91 = tpu.iota {dimensions = array<i32: 0>} : vector<8x16xi32>
    %92 = tpu.iota {dimensions = array<i32: 1>} : vector<8x16xi32>
    %c2_i32 = arith.constant 2 : i32
    %93 = vector.broadcast %c2_i32 : i32 to vector<8x16xi32>
    %94 = arith.muli %93, %91 : vector<8x16xi32>
    %95 = arith.cmpi eq, %92, %94 : vector<8x16xi32>
    %cst_53 = arith.constant 1.000000e+00 : f32
    %cst_54 = arith.constant 0.000000e+00 : f32
    %96 = vector.broadcast %cst_53 : f32 to vector<8x16xf32>
    %97 = vector.broadcast %cst_54 : f32 to vector<8x16xf32>
    %98 = arith.select %95, %96, %97 : vector<8x16xi1>, vector<8x16xf32>
    %99 = arith.truncf %98 : vector<8x16xf32> to vector<8x16xbf16>
    %c2_i32_55 = arith.constant 2 : i32
    %100 = vector.broadcast %c2_i32_55 : i32 to vector<8x16xi32>
    %101 = arith.muli %100, %91 : vector<8x16xi32>
    %c1_i32_56 = arith.constant 1 : i32
    %102 = vector.broadcast %c1_i32_56 : i32 to vector<8x16xi32>
    %103 = arith.addi %101, %102 : vector<8x16xi32>
    %104 = arith.cmpi eq, %92, %103 : vector<8x16xi32>
    %cst_57 = arith.constant 1.000000e+00 : f32
    %cst_58 = arith.constant 0.000000e+00 : f32
    %105 = vector.broadcast %cst_57 : f32 to vector<8x16xf32>
    %106 = vector.broadcast %cst_58 : f32 to vector<8x16xf32>
    %107 = arith.select %104, %105, %106 : vector<8x16xi1>, vector<8x16xf32>
    %108 = arith.truncf %107 : vector<8x16xf32> to vector<8x16xbf16>
    %c2_i32_59 = arith.constant 2 : i32
    %109 = vector.broadcast %c2_i32_59 : i32 to vector<8x16xi32>
    %110 = arith.muli %109, %91 : vector<8x16xi32>
    %c1_i32_60 = arith.constant 1 : i32
    %111 = vector.broadcast %c1_i32_60 : i32 to vector<8x16xi32>
    %112 = arith.subi %110, %111 : vector<8x16xi32>
    %113 = arith.cmpi eq, %92, %112 : vector<8x16xi32>
    %cst_61 = arith.constant 1.000000e+00 : f32
    %cst_62 = arith.constant 0.000000e+00 : f32
    %114 = vector.broadcast %cst_61 : f32 to vector<8x16xf32>
    %115 = vector.broadcast %cst_62 : f32 to vector<8x16xf32>
    %116 = arith.select %113, %114, %115 : vector<8x16xi1>, vector<8x16xf32>
    %117 = arith.truncf %116 : vector<8x16xf32> to vector<8x16xbf16>
    %118 = arith.truncf %90 : vector<16x64xf32> to vector<16x64xbf16>
    %cst_63 = arith.constant dense<0.000000e+00> : vector<8x64xf32>
    %119 = tpu.matmul %99, %118, %cst_63 {dimension_numbers = #tpu.dot_dimension_numbers<[1], [0], [0], [1], [0, 0, 1, 1], [], []>} : vector<8x16xbf16>, vector<16x64xbf16>, vector<8x64xf32> -> vector<8x64xf32>
    %120 = arith.truncf %119 : vector<8x64xf32> to vector<8x64xbf16>
    %cst_64 = arith.constant dense<0.000000e+00> : vector<8x64xf32>
    %121 = tpu.matmul %108, %118, %cst_64 {dimension_numbers = #tpu.dot_dimension_numbers<[1], [0], [0], [1], [0, 0, 1, 1], [], []>} : vector<8x16xbf16>, vector<16x64xbf16>, vector<8x64xf32> -> vector<8x64xf32>
    %122 = arith.truncf %121 : vector<8x64xf32> to vector<8x64xbf16>
    %cst_65 = arith.constant dense<0.000000e+00> : vector<8x64xf32>
    %123 = tpu.matmul %117, %118, %cst_65 {dimension_numbers = #tpu.dot_dimension_numbers<[1], [0], [0], [1], [0, 0, 1, 1], [], []>} : vector<8x16xbf16>, vector<16x64xbf16>, vector<8x64xf32> -> vector<8x64xf32>
    %124 = arith.truncf %123 : vector<8x64xf32> to vector<8x64xbf16>
    %c0_66 = arith.constant 0 : index
    %c0_67 = arith.constant 0 : index
    %c0_68 = arith.constant 0 : index
    %125 = vector.load %arg11[%c0_66, %c0_67, %c0_68] : memref<3x64x128xbf16, #tpu.memory_space<vmem>>, vector<1x64x128xbf16>
    %126 = vector.shape_cast %125 : vector<1x64x128xbf16> to vector<64x128xbf16>
    %cst_69 = arith.constant dense<0.000000e+00> : vector<8x128xf32>
    %127 = tpu.matmul %124, %126, %cst_69 {dimension_numbers = #tpu.dot_dimension_numbers<[1], [0], [0], [1], [0, 0, 1, 1], [], []>} : vector<8x64xbf16>, vector<64x128xbf16>, vector<8x128xf32> -> vector<8x128xf32>
    %c1_70 = arith.constant 1 : index
    %c0_71 = arith.constant 0 : index
    %c0_72 = arith.constant 0 : index
    %128 = vector.load %arg11[%c1_70, %c0_71, %c0_72] : memref<3x64x128xbf16, #tpu.memory_space<vmem>>, vector<1x64x128xbf16>
    %129 = vector.shape_cast %128 : vector<1x64x128xbf16> to vector<64x128xbf16>
    %cst_73 = arith.constant dense<0.000000e+00> : vector<8x128xf32>
    %130 = tpu.matmul %120, %129, %cst_73 {dimension_numbers = #tpu.dot_dimension_numbers<[1], [0], [0], [1], [0, 0, 1, 1], [], []>} : vector<8x64xbf16>, vector<64x128xbf16>, vector<8x128xf32> -> vector<8x128xf32>
    %131 = arith.addf %127, %130 : vector<8x128xf32>
    %c2_74 = arith.constant 2 : index
    %c0_75 = arith.constant 0 : index
    %c0_76 = arith.constant 0 : index
    %132 = vector.load %arg11[%c2_74, %c0_75, %c0_76] : memref<3x64x128xbf16, #tpu.memory_space<vmem>>, vector<1x64x128xbf16>
    %133 = vector.shape_cast %132 : vector<1x64x128xbf16> to vector<64x128xbf16>
    %cst_77 = arith.constant dense<0.000000e+00> : vector<8x128xf32>
    %134 = tpu.matmul %122, %133, %cst_77 {dimension_numbers = #tpu.dot_dimension_numbers<[1], [0], [0], [1], [0, 0, 1, 1], [], []>} : vector<8x64xbf16>, vector<64x128xbf16>, vector<8x128xf32> -> vector<8x128xf32>
    %135 = arith.addf %131, %134 : vector<8x128xf32>
    %c0_78 = arith.constant 0 : index
    %c0_79 = arith.constant 0 : index
    %136 = vector.load %arg12[%c0_78, %c0_79] : memref<1x128xf32, #tpu.memory_space<vmem>>, vector<1x128xf32>
    %137 = vector.broadcast %136 : vector<1x128xf32> to vector<8x128xf32>
    %138 = arith.mulf %135, %137 : vector<8x128xf32>
    %c0_80 = arith.constant 0 : index
    %c0_81 = arith.constant 0 : index
    %139 = vector.load %arg13[%c0_80, %c0_81] : memref<1x128xf32, #tpu.memory_space<vmem>>, vector<1x128xf32>
    %140 = vector.broadcast %139 : vector<1x128xf32> to vector<8x128xf32>
    %141 = arith.addf %138, %140 : vector<8x128xf32>
    %cst_82 = arith.constant 0.000000e+00 : f32
    %142 = vector.broadcast %cst_82 : f32 to vector<8x128xf32>
    %143 = arith.maximumf %141, %142 : vector<8x128xf32>
    %c0_83 = arith.constant 0 : index
    %c0_84 = arith.constant 0 : index
    %144 = vector.load %arg14[%c0_83, %c0_84] : memref<64x128xbf16, #tpu.memory_space<vmem>>, vector<64x128xbf16>
    %cst_85 = arith.constant dense<0.000000e+00> : vector<8x128xf32>
    %145 = tpu.matmul %120, %144, %cst_85 {dimension_numbers = #tpu.dot_dimension_numbers<[1], [0], [0], [1], [0, 0, 1, 1], [], []>} : vector<8x64xbf16>, vector<64x128xbf16>, vector<8x128xf32> -> vector<8x128xf32>
    %c0_86 = arith.constant 0 : index
    %c0_87 = arith.constant 0 : index
    %146 = vector.load %arg15[%c0_86, %c0_87] : memref<1x128xf32, #tpu.memory_space<vmem>>, vector<1x128xf32>
    %147 = vector.broadcast %146 : vector<1x128xf32> to vector<8x128xf32>
    %148 = arith.mulf %145, %147 : vector<8x128xf32>
    %c0_88 = arith.constant 0 : index
    %c0_89 = arith.constant 0 : index
    %149 = vector.load %arg16[%c0_88, %c0_89] : memref<1x128xf32, #tpu.memory_space<vmem>>, vector<1x128xf32>
    %150 = vector.broadcast %149 : vector<1x128xf32> to vector<8x128xf32>
    %151 = arith.addf %148, %150 : vector<8x128xf32>
    %c0_90 = arith.constant 0 : index
    %c0_91 = arith.constant 0 : index
    %152 = vector.load %arg18[%c0_90, %c0_91] : memref<1x128xf32, #tpu.memory_space<vmem>>, vector<1x128xf32>
    %c0_92 = arith.constant 0 : index
    %c0_93 = arith.constant 0 : index
    %153 = vector.load %arg19[%c0_92, %c0_93] : memref<1x128xf32, #tpu.memory_space<vmem>>, vector<1x128xf32>
    %c1_i32_94 = arith.constant 1 : i32
    %154 = tpu.dynamic_rotate %143 by %c1_i32_94 dim 0 : vector<8x128xf32>, i32 -> vector<8x128xf32>
    %155 = tpu.iota {dimensions = array<i32: 0>} : vector<8x128xi32>
    %c0_i32_95 = arith.constant 0 : i32
    %156 = vector.broadcast %c0_i32_95 : i32 to vector<8x128xi32>
    %157 = arith.cmpi eq, %155, %156 : vector<8x128xi32>
    %cst_96 = arith.constant 0.000000e+00 : f32
    %158 = vector.broadcast %cst_96 : f32 to vector<8x128xf32>
    %159 = arith.select %157, %158, %154 : vector<8x128xi1>, vector<8x128xf32>
    %160 = arith.truncf %159 : vector<8x128xf32> to vector<8x128xbf16>
    %c0_97 = arith.constant 0 : index
    %c0_98 = arith.constant 0 : index
    %c0_99 = arith.constant 0 : index
    %161 = vector.load %arg17[%c0_97, %c0_98, %c0_99] : memref<3x128x128xbf16, #tpu.memory_space<vmem>>, vector<1x128x128xbf16>
    %162 = vector.shape_cast %161 : vector<1x128x128xbf16> to vector<128x128xbf16>
    %cst_100 = arith.constant dense<0.000000e+00> : vector<8x128xf32>
    %163 = tpu.matmul %160, %162, %cst_100 {dimension_numbers = #tpu.dot_dimension_numbers<[1], [0], [0], [1], [0, 0, 1, 1], [], []>} : vector<8x128xbf16>, vector<128x128xbf16>, vector<8x128xf32> -> vector<8x128xf32>
    %164 = arith.truncf %143 : vector<8x128xf32> to vector<8x128xbf16>
    %c1_101 = arith.constant 1 : index
    %c0_102 = arith.constant 0 : index
    %c0_103 = arith.constant 0 : index
    %165 = vector.load %arg17[%c1_101, %c0_102, %c0_103] : memref<3x128x128xbf16, #tpu.memory_space<vmem>>, vector<1x128x128xbf16>
    %166 = vector.shape_cast %165 : vector<1x128x128xbf16> to vector<128x128xbf16>
    %cst_104 = arith.constant dense<0.000000e+00> : vector<8x128xf32>
    %167 = tpu.matmul %164, %166, %cst_104 {dimension_numbers = #tpu.dot_dimension_numbers<[1], [0], [0], [1], [0, 0, 1, 1], [], []>} : vector<8x128xbf16>, vector<128x128xbf16>, vector<8x128xf32> -> vector<8x128xf32>
    %168 = arith.addf %163, %167 : vector<8x128xf32>
    %c7_i32 = arith.constant 7 : i32
    %169 = tpu.dynamic_rotate %143 by %c7_i32 dim 0 : vector<8x128xf32>, i32 -> vector<8x128xf32>
    %170 = tpu.iota {dimensions = array<i32: 0>} : vector<8x128xi32>
    %c7_i32_105 = arith.constant 7 : i32
    %171 = vector.broadcast %c7_i32_105 : i32 to vector<8x128xi32>
    %172 = arith.cmpi eq, %170, %171 : vector<8x128xi32>
    %cst_106 = arith.constant 0.000000e+00 : f32
    %173 = vector.broadcast %cst_106 : f32 to vector<8x128xf32>
    %174 = arith.select %172, %173, %169 : vector<8x128xi1>, vector<8x128xf32>
    %175 = arith.truncf %174 : vector<8x128xf32> to vector<8x128xbf16>
    %c2_107 = arith.constant 2 : index
    %c0_108 = arith.constant 0 : index
    %c0_109 = arith.constant 0 : index
    %176 = vector.load %arg17[%c2_107, %c0_108, %c0_109] : memref<3x128x128xbf16, #tpu.memory_space<vmem>>, vector<1x128x128xbf16>
    %177 = vector.shape_cast %176 : vector<1x128x128xbf16> to vector<128x128xbf16>
    %cst_110 = arith.constant dense<0.000000e+00> : vector<8x128xf32>
    %178 = tpu.matmul %175, %177, %cst_110 {dimension_numbers = #tpu.dot_dimension_numbers<[1], [0], [0], [1], [0, 0, 1, 1], [], []>} : vector<8x128xbf16>, vector<128x128xbf16>, vector<8x128xf32> -> vector<8x128xf32>
    %179 = arith.addf %168, %178 : vector<8x128xf32>
    %180 = vector.broadcast %152 : vector<1x128xf32> to vector<8x128xf32>
    %181 = arith.mulf %179, %180 : vector<8x128xf32>
    %182 = vector.broadcast %153 : vector<1x128xf32> to vector<8x128xf32>
    %183 = arith.addf %181, %182 : vector<8x128xf32>
    %184 = arith.addf %183, %151 : vector<8x128xf32>
    %cst_111 = arith.constant 0.000000e+00 : f32
    %185 = vector.broadcast %cst_111 : f32 to vector<8x128xf32>
    %186 = arith.maximumf %184, %185 : vector<8x128xf32>
    %cst_112 = arith.constant dense<0.000000e+00> : vector<128xf32>
    %187 = vector.multi_reduction <add>, %186, %cst_112 [0] : vector<8x128xf32> to vector<128xf32>
    %188 = vector.shape_cast %187 : vector<128xf32> to vector<1x128xf32>
    %cst_113 = arith.constant 8.000000e+00 : f32
    %189 = vector.broadcast %cst_113 : f32 to vector<1x128xf32>
    %190 = arith.divf %188, %189 : vector<1x128xf32>
    %c0_114 = arith.constant 0 : index
    %c0_115 = arith.constant 0 : index
    %c0_116 = arith.constant 0 : index
    %191 = vector.load %arg23[%c0_114, %c0_115, %c0_116] : memref<1x1x128xf32, #tpu.memory_space<vmem>>, vector<1x1x128xf32>
    %192 = vector.shape_cast %191 : vector<1x1x128xf32> to vector<1x128xf32>
    %193 = vector.shape_cast %190 : vector<1x128xf32> to vector<1x1x128xf32>
    tpu.vector_store %arg23[%c0_114, %c0_115, %c0_116], %193 {strides = array<i32>} : memref<1x1x128xf32, #tpu.memory_space<vmem>>, vector<1x1x128xf32>,
    %c0_117 = arith.constant 0 : index
    %c0_118 = arith.constant 0 : index
    %194 = vector.load %arg20[%c0_117, %c0_118] : memref<128x10xf32, #tpu.memory_space<vmem>>, vector<128x10xf32>
    %cst_119 = arith.constant dense<0.000000e+00> : vector<8x10xf32>
    %195 = tpu.matmul %186, %194, %cst_119 {dimension_numbers = #tpu.dot_dimension_numbers<[1], [0], [0], [1], [0, 0, 1, 1], [], []>} : vector<8x128xf32>, vector<128x10xf32>, vector<8x10xf32> -> vector<8x10xf32>
    %cst_120 = arith.constant dense<0.000000e+00> : vector<10xf32>
    %196 = vector.multi_reduction <add>, %195, %cst_120 [0] : vector<8x10xf32> to vector<10xf32>
    %197 = vector.shape_cast %196 : vector<10xf32> to vector<1x10xf32>
    %cst_121 = arith.constant 8.000000e+00 : f32
    %198 = vector.broadcast %cst_121 : f32 to vector<1x10xf32>
    %199 = arith.divf %197, %198 : vector<1x10xf32>
    %c0_122 = arith.constant 0 : index
    %c0_123 = arith.constant 0 : index
    %200 = vector.load %arg21[%c0_122, %c0_123] : memref<1x10xf32, #tpu.memory_space<vmem>>, vector<1x10xf32>
    %201 = arith.addf %199, %200 : vector<1x10xf32>
    %c0_124 = arith.constant 0 : index
    %c0_125 = arith.constant 0 : index
    %c0_126 = arith.constant 0 : index
    %202 = vector.load %arg22[%c0_124, %c0_125, %c0_126] : memref<1x1x10xf32, #tpu.memory_space<vmem>>, vector<1x1x10xf32>
    %203 = vector.shape_cast %202 : vector<1x1x10xf32> to vector<1x10xf32>
    %204 = vector.shape_cast %201 : vector<1x10xf32> to vector<1x1x10xf32>
    tpu.vector_store %arg22[%c0_124, %c0_125, %c0_126], %204 {strides = array<i32>} : memref<1x1x10xf32, #tpu.memory_space<vmem>>, vector<1x1x10xf32>,
    return
  }
  func.func @transform_0(%arg0: i32) -> (i32, i32, i32) {
    %c0_i32 = arith.constant 0 : i32
    %c0_i32_0 = arith.constant 0 : i32
    %c0_i32_1 = arith.constant 0 : i32
    return %arg0, %c0_i32, %c0_i32_0 : i32, i32, i32
  }
  func.func @transform_1(%arg0: i32) -> (i32, i32) {
    %c0_i32 = arith.constant 0 : i32
    %c0_i32_0 = arith.constant 0 : i32
    %c0_i32_1 = arith.constant 0 : i32
    return %c0_i32, %c0_i32_0 : i32, i32
  }
  func.func @transform_2(%arg0: i32) -> (i32, i32) {
    %c0_i32 = arith.constant 0 : i32
    %c0_i32_0 = arith.constant 0 : i32
    %c0_i32_1 = arith.constant 0 : i32
    return %c0_i32, %c0_i32_0 : i32, i32
  }
  func.func @transform_3(%arg0: i32) -> (i32, i32) {
    %c0_i32 = arith.constant 0 : i32
    %c0_i32_0 = arith.constant 0 : i32
    %c0_i32_1 = arith.constant 0 : i32
    return %c0_i32, %c0_i32_0 : i32, i32
  }
  func.func @transform_4(%arg0: i32) -> (i32, i32, i32) {
    %c0_i32 = arith.constant 0 : i32
    %c0_i32_0 = arith.constant 0 : i32
    %c0_i32_1 = arith.constant 0 : i32
    %c0_i32_2 = arith.constant 0 : i32
    return %c0_i32, %c0_i32_0, %c0_i32_1 : i32, i32, i32
  }
  func.func @transform_5(%arg0: i32) -> (i32, i32) {
    %c0_i32 = arith.constant 0 : i32
    %c0_i32_0 = arith.constant 0 : i32
    %c0_i32_1 = arith.constant 0 : i32
    return %c0_i32, %c0_i32_0 : i32, i32
  }
  func.func @transform_6(%arg0: i32) -> (i32, i32) {
    %c0_i32 = arith.constant 0 : i32
    %c0_i32_0 = arith.constant 0 : i32
    %c0_i32_1 = arith.constant 0 : i32
    return %c0_i32, %c0_i32_0 : i32, i32
  }
  func.func @transform_7(%arg0: i32) -> (i32, i32, i32) {
    %c0_i32 = arith.constant 0 : i32
    %c0_i32_0 = arith.constant 0 : i32
    %c0_i32_1 = arith.constant 0 : i32
    %c0_i32_2 = arith.constant 0 : i32
    return %c0_i32, %c0_i32_0, %c0_i32_1 : i32, i32, i32
  }
  func.func @transform_8(%arg0: i32) -> (i32, i32) {
    %c0_i32 = arith.constant 0 : i32
    %c0_i32_0 = arith.constant 0 : i32
    %c0_i32_1 = arith.constant 0 : i32
    return %c0_i32, %c0_i32_0 : i32, i32
  }
  func.func @transform_9(%arg0: i32) -> (i32, i32) {
    %c0_i32 = arith.constant 0 : i32
    %c0_i32_0 = arith.constant 0 : i32
    %c0_i32_1 = arith.constant 0 : i32
    return %c0_i32, %c0_i32_0 : i32, i32
  }
  func.func @transform_10(%arg0: i32) -> (i32, i32, i32) {
    %c0_i32 = arith.constant 0 : i32
    %c0_i32_0 = arith.constant 0 : i32
    %c0_i32_1 = arith.constant 0 : i32
    %c0_i32_2 = arith.constant 0 : i32
    return %c0_i32, %c0_i32_0, %c0_i32_1 : i32, i32, i32
  }
  func.func @transform_11(%arg0: i32) -> (i32, i32) {
    %c0_i32 = arith.constant 0 : i32
    %c0_i32_0 = arith.constant 0 : i32
    %c0_i32_1 = arith.constant 0 : i32
    return %c0_i32, %c0_i32_0 : i32, i32
  }
  func.func @transform_12(%arg0: i32) -> (i32, i32) {
    %c0_i32 = arith.constant 0 : i32
    %c0_i32_0 = arith.constant 0 : i32
    %c0_i32_1 = arith.constant 0 : i32
    return %c0_i32, %c0_i32_0 : i32, i32
  }
  func.func @transform_13(%arg0: i32) -> (i32, i32) {
    %c0_i32 = arith.constant 0 : i32
    %c0_i32_0 = arith.constant 0 : i32
    %c0_i32_1 = arith.constant 0 : i32
    return %c0_i32, %c0_i32_0 : i32, i32
  }
  func.func @transform_14(%arg0: i32) -> (i32, i32) {
    %c0_i32 = arith.constant 0 : i32
    %c0_i32_0 = arith.constant 0 : i32
    %c0_i32_1 = arith.constant 0 : i32
    return %c0_i32, %c0_i32_0 : i32, i32
  }
  func.func @transform_15(%arg0: i32) -> (i32, i32) {
    %c0_i32 = arith.constant 0 : i32
    %c0_i32_0 = arith.constant 0 : i32
    %c0_i32_1 = arith.constant 0 : i32
    return %c0_i32, %c0_i32_0 : i32, i32
  }
  func.func @transform_16(%arg0: i32) -> (i32, i32, i32) {
    %c0_i32 = arith.constant 0 : i32
    %c0_i32_0 = arith.constant 0 : i32
    %c0_i32_1 = arith.constant 0 : i32
    %c0_i32_2 = arith.constant 0 : i32
    return %c0_i32, %c0_i32_0, %c0_i32_1 : i32, i32, i32
  }
  func.func @transform_17(%arg0: i32) -> (i32, i32) {
    %c0_i32 = arith.constant 0 : i32
    %c0_i32_0 = arith.constant 0 : i32
    %c0_i32_1 = arith.constant 0 : i32
    return %c0_i32, %c0_i32_0 : i32, i32
  }
  func.func @transform_18(%arg0: i32) -> (i32, i32) {
    %c0_i32 = arith.constant 0 : i32
    %c0_i32_0 = arith.constant 0 : i32
    %c0_i32_1 = arith.constant 0 : i32
    return %c0_i32, %c0_i32_0 : i32, i32
  }
  func.func @transform_19(%arg0: i32) -> (i32, i32) {
    %c0_i32 = arith.constant 0 : i32
    %c0_i32_0 = arith.constant 0 : i32
    %c0_i32_1 = arith.constant 0 : i32
    return %c0_i32, %c0_i32_0 : i32, i32
  }
  func.func @transform_20(%arg0: i32) -> (i32, i32) {
    %c0_i32 = arith.constant 0 : i32
    %c0_i32_0 = arith.constant 0 : i32
    %c0_i32_1 = arith.constant 0 : i32
    return %c0_i32, %c0_i32_0 : i32, i32
  }
  func.func @transform_21(%arg0: i32) -> (i32, i32, i32) {
    %c0_i32 = arith.constant 0 : i32
    %c0_i32_0 = arith.constant 0 : i32
    %c0_i32_1 = arith.constant 0 : i32
    return %arg0, %c0_i32, %c0_i32_0 : i32, i32, i32
  }
  func.func @transform_22(%arg0: i32) -> (i32, i32, i32) {
    %c0_i32 = arith.constant 0 : i32
    %c0_i32_0 = arith.constant 0 : i32
    %c0_i32_1 = arith.constant 0 : i32
    return %arg0, %c0_i32, %c0_i32_0 : i32, i32, i32
  }
}

</mosaic_0001>

<bundles_post_ra>
// kernel: _lambda_.1
= control target key start
LH: loop header
LB: loop body
LE: loop exit
PB: predicated region body
PF: predicated region fallthrough
CT: control target
= control target key end

     0   :  { %s4002_s0 = inlined_call_operand.vmem [shape: f32[2,32,8], index: 0, kind: input, shape index: {}]   ;;  %s4003_s1 = inlined_call_operand.vmem [shape: f32[8,64], index: 1, kind: input, shape index: {}]   ;;  %s4004_s2 = inlined_call_operand.vmem [shape: f32[1,64], index: 2, kind: input, shape index: {}, may-alias: {2,5,8}]   ;;  %s4005_s3 = inlined_call_operand.vmem [shape: f32[1,64], index: 3, kind: input, shape index: {}, may-alias: {3,6,9}]   ;;  %s4006_s4 = inlined_call_operand.vmem [shape: bf16[3,64,64], index: 4, kind: input, shape index: {}]   ;;  %s4007_s5 = inlined_call_operand.vmem [shape: f32[1,64], index: 5, kind: input, shape index: {}, may-alias: {2,5,8}]   ;;  %s4008_s6 = inlined_call_operand.vmem [shape: f32[1,64], index: 6, kind: input, shape index: {}, may-alias: {3,6,9}]   ;;  %s4009_s7 = inlined_call_operand.vmem [shape: bf16[3,64,64], index: 7, kind: input, shape index: {}]   ;;  %s4010_s8 = inlined_call_operand.vmem [shape: f32[1,64], index: 8, kind: input, shape index: {}, may-alias: {2,5,8}]   ;;  %s4011_s9 = inlined_call_operand.vmem [shape: f32[1,64], index: 9, kind: input, shape index: {}, may-alias: {3,6,9}]   ;;  %s4012_s10 = inlined_call_operand.hbm [shape: bf16[3,64,128], index: 10, kind: input, shape index: {}]   ;;  %s4013_s11 = inlined_call_operand.vmem [shape: f32[1,128], index: 11, kind: input, shape index: {}, may-alias: {11,14,17}]   ;;  %s4014_s12 = inlined_call_operand.vmem [shape: f32[1,128], index: 12, kind: input, shape index: {}, may-alias: {12,15,18}]   ;;  %s4015_s13 = inlined_call_operand.vmem [shape: bf16[64,128], index: 13, kind: input, shape index: {}]   ;;  %s4016_s14 = inlined_call_operand.vmem [shape: f32[1,128], index: 14, kind: input, shape index: {}, may-alias: {11,14,17}]   ;;  %s4017_s15 = inlined_call_operand.vmem [shape: f32[1,128], index: 15, kind: input, shape index: {}, may-alias: {12,15,18}]   ;;  %s4018_s16 = inlined_call_operand.vmem [shape: bf16[3,128,128], index: 16, kind: input, shape index: {}]   ;;  %s4019_s17 = inlined_call_operand.vmem [shape: f32[1,128], index: 17, kind: input, shape index: {}, may-alias: {11,14,17}]   ;;  %s4020_s18 = inlined_call_operand.vmem [shape: f32[1,128], index: 18, kind: input, shape index: {}, may-alias: {12,15,18}]   ;;  %s4021_s19 = inlined_call_operand.vmem [shape: f32[128,10], index: 19, kind: input, shape index: {}]   ;;  %s4022_s20 = inlined_call_operand.vmem [shape: f32[1,10], index: 20, kind: input, shape index: {}]   ;;  %s4023_s21 = inlined_call_operand.hbm [shape: f32[2,1,10], index: 21, kind: output, shape index: {0}]   ;;  %s4024_s22 = inlined_call_operand.hbm [shape: f32[2,1,128], index: 22, kind: output, shape index: {1}]  }
   0x1   :  { %4037 = sst [smem:[#allocation17_spill]] %s4002_s0 }
   0x2   :  { %4038 = sst [smem:[#allocation18_spill]] %s4003_s1 }
   0x3   :  { %4039 = sst [smem:[#allocation19_spill]] %s4004_s2 }
   0x4   :  { %4040 = sst [smem:[#allocation20_spill]] %s4005_s3 }
   0x5   :  { %4041 = sst [smem:[#allocation21_spill]] %s4006_s4 }
   0x6   :  { %4042 = sst [smem:[#allocation22_spill]] %s4007_s5 }
   0x7   :  { %4043 = sst [smem:[#allocation23_spill]] %s4008_s6 }
   0x8   :  { %28 = vsyncpa [#allocation3], 0 }
   0x9   :  { %29 = vsyncpa [#allocation4], 0 }
   0xa   :  { %31 = vsyncpa [#allocation4 + $0x1], 0 }
   0xb   :  { %32 = vsyncpa [#allocation7], 0 }
   0xc   :  { %34 = vsyncpa [#allocation7 + $0x1], 0  ;;  %s3404_s3 = smov 0   ;;  %s3406_s28 = smov 0  }
   0xd   :  { %s3408_s29 = smov 0   ;;  %s3410_s30 = smov 0  }
   0xe LB: > { %4044 = sst [smem:[#allocation11_spill]] %s3267_s3  ;;  %s3425_s4 = sadd.s32 4294967295, %s3279_s30   ;;  %s3279_s30 = sphi %s3410_s30, %s4070_s30   ;;  %s3275_s29 = sphi %s3408_s29, %s4072_s29   ;;  %s3271_s28 = sphi %s3406_s28, %s4074_s28   ;;  %s3267_s3 = sphi %s3404_s3, %s4073_s3  }
   0xf   : > { %4045 = sst [smem:[#allocation12_spill]] %s3275_s29  ;;  %s2447_s0 = sadd.s32 4294967294, %s3279_s30  }
  0x10   : > { %4046 = sst [smem:[#allocation13_spill]] %s3279_s30  ;;  %s3429_s23 = sadd.s32 1, %s3279_s30  }
  0x11   : > { %4047 = sst [smem:[#allocation14_spill]] %s3429_s23  ;;  %s493_s1 = sadd.s32 1, %s3275_s29 }
  0x12   : > { %s490_s5 = ssub.s32 %s3279_s30, %s3429_s23  ;;  %p503_p0 = scmp.ne.s32.totalorder %s3275_s29, %s3271_s28 }
  0x13   : > { %p491_p1 = scmp.eq.s32.totalorder %s490_s5, 0  ;;  %p504_p2 = scmp.eq.s32.totalorder %s3425_s4, 1 }
  0x14   : > { %p509_p3 = scmp.ne.s32.totalorder %s3271_s28, %s3267_s3  ;;  %p510_p4 = scmp.eq.s32.totalorder %s2447_s0, 1 }
  0x15   : > { %s3440_s24 = scalar_select %p491_p1, %s3275_s29, %s493_s1  }
  0x16   : > { %p3442_p5 = por %p504_p2, %p503_p0  ;;  %p3446_p6 = por %p510_p4, %p509_p3 }
  0x17   : > { %4048 = sst [smem:[#allocation15_spill]] %s3440_s24  ;;  %p2448_p7 = scmp.ge.s32.totalorder %s3279_s30, 1 }
  0x18   : > { %s4049_s6 = scalar_select %p3442_p5, 1, 0 }
  0x19   : > { %s4050_s25 = scalar_select %p3446_p6, 1, 0 }
  0x1a   : > { %p543_p8 = scmp.lt.s32.totalorder %s3279_s30, 3  ;;  %p4031_p9 = scmp.eq.s32.totalorder %s3425_s4, 0 }
  0x1b   : > { %4051 = sst [smem:[#allocation16_spill]] %s4050_s25  ;;  %s3281_s2 = smov [#allocation2]  }
  0x1c   : > { %p3453_p10 = pnand %p2448_p7, %p543_p8  ;;  %s582_s27 = sshll.u32 %s3281_s2, 4  ;;  %s583_s27 = int_to_ptr.vmem [resolvable:$true] %s582_s27 }
  0x1d   : > { %s3153_s24 = scalar_lea.hbm %s4012_s10, 1536 }
  0x1e   : > { %s4052_s26 = scalar_select %p3453_p10, 1, 0 }
  0x1f   : > { %p3037_p11 = pneg %p3453_p10  ;;  %p3154_p13 = scmp.ne.s32.totalorder %s4012_s10, %s3153_s24 }
  0x20   : > { %p3160_p3 = scmp.lt.u32.totalorder %s3153_s24, %s4012_s10 }
  0x21   : > { %p3461_p12 = pnand %p4031_p9, %p3037_p11 }
  0x23   : > { %p3155_p0 = pneg %p3461_p12 }
  0x25   : > { %p3156_p1 = pnand %p3155_p0, %p3154_p13 }
  0x27   : > { %p3157_p2 = pneg %p3156_p1 }
  0x29   : > { %p3162_p4 = pnand %p3160_p3, %p3157_p2 }
  0x2b   : > { %3165 = shalt.err (!%p3162_p4)
}
  0x2c   : > { %s3166_s3 = scalar_lea.vmem %s583_s27, 1536  ;;  %p3174_p9 = scmp.lt.s32.totalorder %s583_s27, %s583_s27 }
  0x2d   : > { %p3167_p7 = scmp.ne.s32.totalorder %s583_s27, %s3166_s3  ;;  %p3175_p6 = scmp.lt.s32.totalorder %s3166_s3, %s3166_s3 }
  0x2f   : > { %p3169_p8 = pnand %p3167_p7, %p3155_p0  ;;  %p3176_p5 = por %p3175_p6, %p3174_p9 }
  0x31   : > { %p3170_p11 = pneg %p3169_p8 }
  0x33   : > { %p3177_p10 = pnand %p3176_p5, %p3170_p11 }
  0x35   : > { %3180 = shalt.err (!%p3177_p10)
}
  0x36   : > { %s3282_s29 = smov 64   ;;  %s3283_s23 = smov 4  }
  0x37   : > { %3040 = dma.hbm_to_vmem [thread:$0]  (!%p3461_p12), %s4012_s10, 1536, %s583_s27, [#allocation3], %s3282_s29, %s3282_s29, %s3283_s23  }
  0x38   : > { %p4054_p13 = scmp.ne.s32.totalorder %s4052_s26, 0 }
  0x39   : > { %p4055_p1 = scmp.eq.s32.totalorder (!%p4054_p13), %s3425_s4, 0 }
  0x3a   : > { %636 = sbr.rel (%p4054_p13) target bundleno = 1803 (0x70b), region = 104 }
  0x41   : > { %3254 = dma.done.wait (%p4055_p1), [#allocation3], 1536   ;;  %p4056_p0 = pmov %p4055_p1 }
  0x42   : > { %p701_p5 = scmp.lt.s32.totalorder %s3425_s4, 1  ;;  %s4057_s2 = sld [smem:[#allocation17_spill]]  ;;  %vm712_vm0 = vcmask 64512   ;;  %v3284_v6 = vmov 0.0   ;;  %vm3285_vm1 = vmmov 0   ;;  %v838_v20 = vlaneseq  ;;  %v3101_v61 = vld [vmem:[%s4009_s7 + $0x20] sm:$0xff]  }
  0x43   : > { %3256 = vsyncadd (%p4056_p0), [#allocation3], 4294965760  ;;  %s4058_s26 = sld [smem:[#allocation18_spill]]  ;;  %s4059_s5 = sld [smem:[#allocation21_spill]]  ;;  %2742 = vmatprep.subr.bf16.mxu0 %v3284_v6  ;;  %2750 = vmatprep.mubr.msk.bf16.mxu0 %vm3285_vm1, %v3284_v6  ;;  %vm903_vm4 = vcmask 523264   ;;  %v3102_v62 = vld [vmem:[%s4009_s7 + $0x28] sm:$0xff]  }
  0x44   : > { %s702_s3 = scalar_select %p701_p5, %s3425_s4, 1  ;;  %v3540_v28 = vshrl.u32 %v838_v20, 7  ;;  %v3103_v63 = vld [vmem:[%s4009_s7 + $0x30] sm:$0xff]   ;;  %vm1407_vm9 = vcmask 130048  }
  0x45   : > { %s4036_s1 = sshll.u32 %s3425_s4, 4  ;;  %p4064_p9 = scmp.ne.s32.totalorder %s4049_s6, 0 }
  0x46   : > { %s2627_s24 = sshll.u32 %s702_s3, 5  ;;  %vm840_vm2 = vcmp.lt.s32.totalorder %v3540_v28, 1  ;;  %vm844_vm3 = vcmp.eq.s32.totalorder %v3540_v28, 0  ;;  %v3579_v53 = vadd.s32 8, %v3540_v28  ;;  %vm1018_vm5 = vcmp.lt.s32.totalorder %v3540_v28, 7  ;;  %s3287_s27 = smov [#allocation6]  }
  0x47   : > { %vm2587_vm11 = vmneg %vm844_vm3  ;;  %vm2628_vm13 = vcmp.ne.s32.totalorder %v3540_v28, 7  ;;  %s3185_s29 = sshll.u32 %s3287_s27, 4  ;;  %s3186_s29 = int_to_ptr.vmem [resolvable:$false] %s3185_s29 }
  0x48   : > { %s705_s30 = scalar_lea.vmem %s4057_s2, %s2627_s24  ;;  %s4060_s2 = sld [smem:[#allocation19_spill]]  ;;  %vm1022_vm6 = vcmp.eq.s32.totalorder %v3579_v53, 15  ;;  %vm2589_vm12 = vmpackc.low %vm2587_vm11, %vm2587_vm11 }
  0x49   : > { %v711_v0 = vld [vmem:[%s4058_s26] sm:$0xff]  ;;  %v708_v2 = vld [vmem:[%s705_s30 + $0x8] sm:$0xff]  ;;  %v709_v3 = vld [vmem:[%s705_s30 + $0x10] sm:$0xff]  ;;  %s4061_s26 = sld [smem:[#allocation20_spill]] }
  0x4a   : > { %v707_v1 = vld [vmem:[%s705_s30] sm:$0xff]  ;;  %2734 = vmatprep.subr.mxu1 %v711_v0  ;;  %v710_v4 = vld [vmem:[%s705_s30 + $0x18] sm:$0xff]  ;;  %v3091_v8 = vld [vmem:[%s4059_s5 + $0x28] sm:$0xff]   ;;  %s3930_s30 = scalar_lea.hbm %s4024_s22, %s4036_s1 }
  0x4b   : > { %2736 = vmatprep.mubr.msk.f32.mxu1 %vm712_vm0, %v707_v1  ;;  %2735 = vmatpush3.msra.mxu1 %v711_v0  ;;  %v3089_v5 = vld [vmem:[%s4059_s5 + $0x20] sm:$0xff]   ;;  %v3092_v9 = vld [vmem:[%s4059_s5 + $0x8] sm:$0xff]   ;;  %v3093_v10 = vld [vmem:[%s4059_s5 + $0x30] sm:$0xff]  }
  0x4c   : > { %2737 = vmatmul.mubr.msk.f32.vlgmr.msra.gmra.mrb[0].mxu1 %vm712_vm0, %v708_v2  ;;  %2754 = vmatprep.subr.bf16.mxu1 %v3284_v6  ;;  %v3090_v7 = vld [vmem:[%s4059_s5] sm:$0xff]   ;;  %v3094_v11 = vld [vmem:[%s4059_s5 + $0x10] sm:$0xff]   ;;  %v3095_v12 = vld [vmem:[%s4059_s5 + $0x38] sm:$0xff]  }
  0x4d   : > { %2739 = vmatprep.mubr.msk.f32.mxu1 %vm712_vm0, %v709_v3  ;;  %2743 = vmatpush3.bf16.msra.mxu0 %v3089_v5  ;;  %v3096_v13 = vld [vmem:[%s4059_s5 + $0x18] sm:$0xff]   ;;  %v3097_v49 = vld [vmem:[%s4059_s5 + $0x40] sm:$0xff]   ;;  %v3098_v51 = vld [vmem:[%s4059_s5 + $0x48] sm:$0xff]  }
  0x4e   : > { %2744 = vmatprep.subr.bf16.mxu0 %v3284_v6  ;;  %2755 = vmatpush3.bf16.msra.mxu1 %v3090_v7  ;;  %v2459_v14 = vld [vmem:[%s4060_s2] ss:$0 sm:$0xff]  ;;  %v3099_v55 = vld [vmem:[%s4059_s5 + $0x50] sm:$0xff]   ;;  %v3100_v57 = vld [vmem:[%s4059_s5 + $0x58] sm:$0xff]   ;;  %s4062_s2 = sld [smem:[#allocation22_spill]]  ;;  %s3187_s5 = scalar_lea.vmem %s3186_s29, 32 }
  0x4f   : > { %2756 = vmatprep.subr.bf16.mxu1 %v3284_v6  ;;  %v2460_v18 = vld [vmem:[%s4061_s26] ss:$0 sm:$0xff]  ;;  %v3104_v0 = vld [vmem:[%s4009_s7 + $0x38] sm:$0xff]   ;;  %s4063_s26 = sld [smem:[#allocation23_spill]]  ;;  %vm2618_vm14 = vmpackc.low %vm2628_vm13, %vm2628_vm13 }
  0x50   : > { %2740 = vmatmul.mubr.msk.f32.gmra.mrb[2].mxu1 %vm712_vm0, %v710_v4 }
  0x51   : > { %2745 = vmatpush3.bf16.msra.mxu0 %v3091_v8  ;;  %2762 = vmatprep.mubr.msk.bf16.mxu1 %vm3285_vm1, %v3284_v6 }
  0x52   : > { %2746 = vmatprep.subr.bf16.mxu0 %v3284_v6  ;;  %2757 = vmatpush3.bf16.msra.mxu1 %v3092_v9 }
  0x53   : > { %2758 = vmatprep.subr.bf16.mxu1 %v3284_v6 }
  0x54   : > { %v2492_v5 = vld [vmem:[%s4062_s2] ss:$0 sm:$0xff] }
  0x55   : > { %2747 = vmatpush3.bf16.msra.mxu0 %v3093_v10  ;;  %v2493_v10 = vld [vmem:[%s4063_s26] ss:$0 sm:$0xff]  ;;  %s3921_s26 = sand.u32 1, %s3271_s28  }
  0x56   : > { %2748 = vmatprep.subr.bf16.mxu0 %v3284_v6  ;;  %2759 = vmatpush3.bf16.msra.mxu1 %v3094_v11  ;;  %s700_s23 = scalar_lea.vmem [#allocation6], %s3921_s26  ;;  %s2327_s0 = scalar_lea.sflag [#allocation7], %s3921_s26 }
  0x57   : > { %2760 = vmatprep.subr.bf16.mxu1 %v3284_v6  ;;  %s2352_s25 = sshll.u32 %s700_s23, 4  ;;  %s2353_s25 = int_to_ptr.vmem [resolvable:$true] %s2352_s25 }
  0x58   : > { %s3181_s2 = scalar_lea.vmem %s2353_s25, 16  ;;  %p3188_p2 = scmp.lt.s32.totalorder %s2353_s25, %s3186_s29 }
  0x59   : > { %2749 = vmatpush3.bf16.msra.mxu0 %v3095_v12  ;;  %p3182_p6 = scmp.ne.s32.totalorder %s2353_s25, %s3181_s2  ;;  %p3189_p3 = scmp.lt.s32.totalorder %s3187_s5, %s3181_s2 }
  0x5a   : > { %2778 = vmatprep.subr.bf16.mxu0 %v3284_v6  ;;  %2761 = vmatpush3.bf16.msra.mxu1 %v3096_v13 }
  0x5b   : > { %2766 = vmatprep.subr.bf16.mxu1 %v3284_v6  ;;  %p3183_p10 = pnand %p3182_p6, %p4064_p9  ;;  %p3190_p4 = por %p3189_p3, %p3188_p2 }
  0x5d   : > { %p3184_p12 = pneg %p3183_p10 }
  0x5f   : > { %p3191_p7 = pnand %p3190_p4, %p3184_p12 }
 0x11f   : > { %v2738_v15 = vpop.f32.mrb[0].mxu1 }
 0x120   : > { %v818_v16 = vmul.f32 %v2738_v15, %v2459_v14  ;;  %v791_v17 = vpop.f32.mrb[1].mxu1 }
 0x121   : > { %v817_v19 = vmul.f32 %v2459_v14, %v791_v17 }
 0x122   : > { %v829_v22 = vadd.f32 %v2460_v18, %v818_v16 }
 0x123   : > { %v2741_v21 = vpop.f32.mrb[2].mxu1  ;;  %v828_v25 = vadd.f32 %v2460_v18, %v817_v19 }
 0x124   : > { %v820_v23 = vmul.f32 %v2741_v21, %v2459_v14  ;;  %v801_v24 = vpop.f32.mrb[3].mxu1  ;;  %v833_v30 = vmax.f32 %v829_v22, 0.0  ;;  %v3105_v22 = vld [vmem:[%s4009_s7] sm:$0xff]  }
 0x125   : > { %v819_v26 = vmul.f32 %v2459_v14, %v801_v24  ;;  %v832_v32 = vmax.f32 %v828_v25, 0.0 }
 0x126   : > { %v831_v27 = vadd.f32 %v2460_v18, %v820_v23 }
 0x127   : > { %v830_v29 = vadd.f32 %v2460_v18, %v819_v26 }
 0x128   : > { %v835_v31 = vmax.f32 %v831_v27, 0.0 }
 0x129   : > { %v834_v33 = vmax.f32 %v830_v29, 0.0 }
 0x12a   : > { %v837_v34 = vrot.slane %v835_v31, 7  ;;  %v849_v35 = vmax.f32 %v833_v30, %v835_v31 }
 0x12b   : > { %v836_v36 = vrot.slane %v834_v33, 7  ;;  %v848_v37 = vmax.f32 %v832_v32, %v834_v33  ;;  %v3106_v32 = vld [vmem:[%s4009_s7 + $0x8] sm:$0xff]  }
 0x12d   : > { %v841_v38 = vsel %vm840_vm2, %v836_v36, %v837_v34  ;;  %v842_v39 = vsel %vm840_vm2, %v837_v34, %v836_v36 }
 0x12e   : > { %v846_v40 = vsel %vm844_vm3, 0.0, %v842_v39  ;;  %v3550_v41 = vmax.f32 %v849_v35, %v841_v38  ;;  %v3108_v38 = vld [vmem:[%s4009_s7 + $0x18] sm:$0xff]   ;;  %v3109_v39 = vld [vmem:[%s4009_s7 + $0x40] sm:$0xff]  }
 0x12f   : > { %v3552_v42 = vmax.f32 %v848_v37, %v846_v40  ;;  %v3107_v37 = vld [vmem:[%s4009_s7 + $0x10] sm:$0xff]   ;;  %v3110_v40 = vld [vmem:[%s4009_s7 + $0x48] sm:$0xff]  }
 0x130   : > { %v855_v43 = vrot.slane %v3550_v41, 7  ;;  %v1017_v54 = vrot.slane %v3550_v41, 1 }
 0x131   : > { %v854_v44 = vrot.slane %v3552_v42, 7  ;;  %v869_v45 = vpack.c.bf16 %v3550_v41, %v3552_v42  ;;  %v1016_v52 = vrot.slane %v3552_v42, 1 }
 0x133   : > { %v856_v46 = vsel %vm840_vm2, %v854_v44, %v855_v43  ;;  %v857_v47 = vsel %vm840_vm2, %v855_v43, %v854_v44  ;;  %2751 = vmatmul.mubr.msk.bf16.vlgmr.msra.gmra.mrb[0].mxu0 %vm903_vm4, %v869_v45  ;;  %v1020_v56 = vsel %vm1018_vm5, %v1017_v54, %v1016_v52  ;;  %v1019_v58 = vsel %vm1018_vm5, %v1016_v52, %v1017_v54  ;;  %v3111_v43 = vld [vmem:[%s4009_s7 + $0x50] sm:$0xff]   ;;  %v3112_v44 = vld [vmem:[%s4009_s7 + $0x58] sm:$0xff]   ;;  %v2525_v45 = vld [vmem:[%s4010_s8] ss:$0 sm:$0xff] }
 0x134   : > { %v858_v48 = vsel %vm844_vm3, 0.0, %v857_v47  ;;  %2786 = vmatprep.mubr.msk.bf16.mxu0 %vm3285_vm1, %v3284_v6  ;;  %v1024_v59 = vsel %vm1022_vm6, 0.0, %v1020_v56  ;;  %2779 = vmatpush3.bf16.msra.mxu0 %v3101_v61  ;;  %v1393_v52 = vand.u32 127, %v838_v20 }
 0x135   : > { %v860_v50 = vpack.c.bf16 %v856_v46, %v858_v48  ;;  %v1025_v60 = vpack.c.bf16 %v1024_v59, %v1019_v58  ;;  %2780 = vmatprep.subr.bf16.mxu0 %v3284_v6  ;;  %v2526_v46 = vld [vmem:[%s4011_s9] ss:$0 sm:$0xff]  ;;  %v1394_v48 = vmul.u32 2, %v3540_v28  ;;  %v2238_v28 = vld [vmem:[%s4021_s19 + $0x78] sm:$0xff] }
 0x137   : > { %2763 = vmatmul.mubr.msk.bf16.vlgmr.msra.gmra.mrb[4].mxu1 %vm903_vm4, %v860_v50  ;;  %v2527_v53 = vadd.s32 4294967295, %v1394_v48  ;;  %vm1395_vm7 = vcmp.eq.s32.totalorder %v1393_v52, %v1394_v48 }
 0x138   : > { %2767 = vmatpush3.bf16.msra.mxu1 %v3097_v49  ;;  %2774 = vmatprep.mubr.msk.bf16.mxu1 %vm3285_vm1, %v3284_v6 }
 0x139   : > { %2768 = vmatprep.subr.bf16.mxu1 %v3284_v6  ;;  %2781 = vmatpush3.bf16.msra.mxu0 %v3102_v62  ;;  %vm1403_vm8 = vcmp.eq.s32.totalorder %v1393_v52, %v2527_v53  ;;  %v1396_v62 = vsel %vm1395_vm7, 1.0, %v3284_v6 }
 0x13a   : > { %2782 = vmatprep.subr.bf16.mxu0 %v3284_v6  ;;  %v1397_v20 = vpack.c.bf16 %v1396_v62, %v1396_v62 }
 0x13c   : > { %2769 = vmatpush3.bf16.msra.mxu1 %v3098_v51 }
 0x13d   : > { %2770 = vmatprep.subr.bf16.mxu1 %v3284_v6  ;;  %2783 = vmatpush3.bf16.msra.mxu0 %v3103_v63  ;;  %v1404_v63 = vsel %vm1403_vm8, 1.0, %v3284_v6 }
 0x13e   : > { %2784 = vmatprep.subr.bf16.mxu0 %v3284_v6 }
 0x140   : > { %2771 = vmatpush3.bf16.msra.mxu1 %v3099_v55 }
 0x141   : > { %2772 = vmatprep.subr.bf16.mxu1 %v3284_v6  ;;  %2785 = vmatpush3.bf16.msra.mxu0 %v3104_v0  ;;  %v1398_v0 = vadd.s32 1, %v1394_v48  ;;  %v2224_v48 = vld [vmem:[%s4021_s19 + $0x8] sm:$0xff] }
 0x142   : > { %2790 = vmatprep.subr.bf16.mxu0 %v3284_v6 }
 0x143   : > { %vm1399_vm10 = vcmp.eq.s32.totalorder %v1393_v52, %v1398_v0  ;;  %v2226_v52 = vld [vmem:[%s4021_s19 + $0x18] sm:$0xff] }
 0x144   : > { %2773 = vmatpush3.bf16.msra.mxu1 %v3100_v57  ;;  %v2234_v0 = vld [vmem:[%s4021_s19 + $0x58] sm:$0xff] }
 0x145   : > { %2826 = vmatprep.subr.bf16.mxu1 %v3284_v6 }
 0x147   : > { %2775 = vmatmul.mubr.msk.bf16.vlgmr.msra.gmra.mrb[4].mxu1 %vm903_vm4, %v1025_v60 }
 0x148   : > { %2828 = vmatprep.mubr.msk.bf16.mxu1 %vm3285_vm1, %v3284_v6 }
 0x206   : > { %v941_v1 = vpop.f32.mrb[0].mxu0 }
 0x207   : > { %v2752_v2 = vpop.f32.mrb[1].mxu0 }
 0x208   : > { %v944_v3 = vpop.f32.mrb[2].mxu0  ;;  %v1405_v2 = vpack.c.bf16 %v1404_v63, %v1404_v63  ;;  %v2233_v63 = vld [vmem:[%s4021_s19 + $0x50] sm:$0xff] }
 0x209   : > { %v2753_v4 = vpop.f32.mrb[3].mxu0 }
 0x21a   : > { %v1096_v7 = vpop.f32.mrb[4].mxu1 }
 0x21b   : > { %v2999_v8 = vadd.f32 %v1096_v7, %v941_v1  ;;  %v2776_v9 = vpop.f32.mrb[5].mxu1  ;;  %v3118_v7 = vld [vmem:[%s4015_s13 + $0x10] sm:$0xff]  }
 0x21c   : > { %v1099_v11 = vpop.f32.mrb[6].mxu1  ;;  %v3117_v9 = vld [vmem:[#allocation2 + $0x30] sm:$0xff]  }
 0x21d   : > { %v1111_v12 = vmul.f32 %v2999_v8, %v2492_v5  ;;  %v3000_v13 = vadd.f32 %v1099_v11, %v944_v3  ;;  %v2777_v14 = vpop.f32.mrb[7].mxu1  ;;  %v3116_v3 = vld [vmem:[%s4015_s13 + $0x8] sm:$0xff]   ;;  %v3120_v11 = vld [vmem:[%s4015_s13 + $0x18] sm:$0xff]  }
 0x21e   : > { %v3115_v8 = vld [vmem:[#allocation2 + $0x28] sm:$0xff]  }
 0x21f   : > { %v1119_v15 = vadd.f32 %v2493_v10, %v1111_v12  ;;  %v1112_v16 = vmul.f32 %v3000_v13, %v2492_v5  ;;  %v3113_v5 = vld [vmem:[#allocation2 + $0x20] sm:$0xff]  }
 0x220   : > { %v3121_v13 = vld [vmem:[#allocation2] sm:$0xff]  }
 0x221   : > { %v1121_v17 = vmax.f32 %v1119_v15, 0.0  ;;  %v1120_v18 = vadd.f32 %v2493_v10, %v1112_v16  ;;  %v3119_v10 = vld [vmem:[#allocation2 + $0x38] sm:$0xff]  }
 0x223   : > { %v1122_v19 = vmax.f32 %v1120_v18, 0.0  ;;  %v1125_v21 = vrot.slane %v1121_v17, 7  ;;  %v1286_v23 = vrot.slane %v1121_v17, 1 }
 0x225   : > { %v1126_v24 = vrot.slane %v1122_v19, 7  ;;  %v1140_v25 = vpack.c.bf16 %v1122_v19, %v1121_v17  ;;  %v1287_v26 = vrot.slane %v1122_v19, 1 }
 0x227   : > { %2787 = vmatmul.mubr.msk.bf16.vlgmr.msra.gmra.mrb[4].mxu0 %vm903_vm4, %v1140_v25  ;;  %v1127_v27 = vsel %vm840_vm2, %v1125_v21, %v1126_v24  ;;  %v1128_v29 = vsel %vm840_vm2, %v1126_v24, %v1125_v21  ;;  %v1288_v30 = vsel %vm1018_vm5, %v1286_v23, %v1287_v26  ;;  %v1289_v31 = vsel %vm1018_vm5, %v1287_v26, %v1286_v23  ;;  %v3122_v23 = vld [vmem:[#allocation2 + $0x8] sm:$0xff]   ;;  %v3123_v24 = vld [vmem:[#allocation2 + $0x10] sm:$0xff]  }
 0x228   : > { %2791 = vmatpush3.bf16.msra.mxu0 %v3105_v22  ;;  %2798 = vmatprep.mubr.msk.bf16.mxu0 %vm3285_vm1, %v3284_v6  ;;  %v1129_v33 = vsel %vm844_vm3, 0.0, %v1128_v29  ;;  %v1291_v34 = vsel %vm1022_vm6, 0.0, %v1289_v31 }
 0x229   : > { %2792 = vmatprep.subr.bf16.mxu0 %v3284_v6  ;;  %v1131_v35 = vpack.c.bf16 %v1127_v27, %v1129_v33  ;;  %v1292_v36 = vpack.c.bf16 %v1291_v34, %v1288_v30  ;;  %v3124_v30 = vld [vmem:[#allocation2 + $0x18] sm:$0xff]   ;;  %v3126_v33 = vld [vmem:[#allocation2 + $0x48] sm:$0xff]   ;;  %v3127_v34 = vld [vmem:[#allocation2 + $0x50] sm:$0xff]  }
 0x22c   : > { %2793 = vmatpush3.bf16.msra.mxu0 %v3106_v32  ;;  %v3125_v32 = vld [vmem:[#allocation2 + $0x40] sm:$0xff]  }
 0x22d   : > { %2794 = vmatprep.subr.bf16.mxu0 %v3284_v6 }
 0x230   : > { %2795 = vmatpush3.bf16.msra.mxu0 %v3107_v37  ;;  %v3129_v37 = vld [vmem:[%s4018_s16 + $0x40] sm:$0xff]  }
 0x231   : > { %2796 = vmatprep.subr.bf16.mxu0 %v3284_v6 }
 0x234   : > { %2797 = vmatpush3.bf16.msra.mxu0 %v3108_v38  ;;  %v3130_v38 = vld [vmem:[%s4018_s16 + $0x48] sm:$0xff]  }
 0x235   : > { %2802 = vmatprep.subr.bf16.mxu0 %v3284_v6 }
 0x237   : > { %2799 = vmatmul.mubr.msk.bf16.vlgmr.msra.gmra.mrb[4].mxu0 %vm903_vm4, %v1131_v35  ;;  %v3128_v35 = vld [vmem:[#allocation2 + $0x58] sm:$0xff]  }
 0x238   : > { %2803 = vmatpush3.bf16.msra.mxu0 %v3109_v39  ;;  %2810 = vmatprep.mubr.msk.bf16.mxu0 %vm3285_vm1, %v3284_v6  ;;  %v3131_v39 = vld [vmem:[%s4018_s16 + $0x50] sm:$0xff]  }
 0x239   : > { %2804 = vmatprep.subr.bf16.mxu0 %v3284_v6 }
 0x23c   : > { %2805 = vmatpush3.bf16.msra.mxu0 %v3110_v40  ;;  %v3132_v40 = vld [vmem:[%s4018_s16 + $0x58] sm:$0xff]  }
 0x23d   : > { %2806 = vmatprep.subr.bf16.mxu0 %v3284_v6 }
 0x240   : > { %2807 = vmatpush3.bf16.msra.mxu0 %v3111_v43  ;;  %v3133_v43 = vld [vmem:[%s4018_s16 + $0x60] sm:$0xff]  }
 0x241   : > { %2808 = vmatprep.subr.bf16.mxu0 %v3284_v6 }
 0x244   : > { %2809 = vmatpush3.bf16.msra.mxu0 %v3112_v44  ;;  %v3134_v44 = vld [vmem:[%s4018_s16 + $0x68] sm:$0xff]  }
 0x245   : > { %2814 = vmatprep.subr.bf16.mxu0 %v3284_v6 }
 0x247   : > { %2811 = vmatmul.mubr.msk.bf16.vlgmr.msra.gmra.mrb[4].mxu0 %vm903_vm4, %v1292_v36 }
 0x248   : > { %2816 = vmatprep.mubr.msk.bf16.mxu0 %vm3285_vm1, %v3284_v6 }
 0x31a   : > { %v1363_v47 = vpop.f32.mrb[4].mxu0 }
 0x31b   : > { %v1378_v49 = vmul.f32 %v2525_v45, %v1363_v47  ;;  %v2812_v50 = vpop.f32.mrb[5].mxu0  ;;  %v2223_v47 = vld [vmem:[%s4021_s19] sm:$0xff] }
 0x31c   : > { %v1366_v51 = vpop.f32.mrb[6].mxu0  ;;  %v3286_v50 = vmov 0.0|0.0  }
 0x31d   : > { %v1386_v54 = vadd.f32 %v2526_v46, %v1378_v49  ;;  %v1379_v55 = vmul.f32 %v2525_v45, %v1366_v51  ;;  %v2813_v56 = vpop.f32.mrb[7].mxu0  ;;  %v3135_v45 = vld [vmem:[%s4018_s16 + $0x70] sm:$0xff]   ;;  %v2976_v51 = vpack.c.bf16 %v2224_v48, %v2223_v47 }
 0x31e   : > { %v2225_v49 = vld [vmem:[%s4021_s19 + $0x10] sm:$0xff] }
 0x31f   : > { %v1388_v57 = vadd.f32 %v1386_v54, %v3552_v42  ;;  %v1387_v58 = vadd.f32 %v2526_v46, %v1379_v55  ;;  %v1400_v42 = vsel %vm1399_vm10, 1.0, %v3284_v6  ;;  %v3136_v46 = vld [vmem:[%s4018_s16 + $0x78] sm:$0xff]   ;;  %v2979_v53 = vpack.c.bf16 %v2226_v52, %v2225_v49  ;;  %v2227_v54 = vld [vmem:[%s4021_s19 + $0x20] sm:$0xff]  ;;  %v2228_v55 = vld [vmem:[%s4021_s19 + $0x28] sm:$0xff] }
 0x320   : > { %v1401_v4 = vpack.c.bf16 %v1400_v42, %v1400_v42  ;;  %v2982_v56 = vpack.c.bf16 %v2228_v55, %v2227_v54 }
 0x321   : > { %v1389_v59 = vadd.f32 %v1387_v58, %v3550_v41  ;;  %v1390_v60 = vmax.f32 %v1388_v57, 0.0  ;;  %v3114_v41 = vld [vmem:[%s4015_s13] sm:$0xff]   ;;  %v2229_v57 = vld [vmem:[%s4021_s19 + $0x30] sm:$0xff]  ;;  %v2230_v58 = vld [vmem:[%s4021_s19 + $0x38] sm:$0xff] }
 0x323   : > { %v1391_v61 = vmax.f32 %v1389_v59, 0.0  ;;  %v2985_v59 = vpack.c.bf16 %v2230_v58, %v2229_v57 }
 0x325   : > { %v1406_v1 = vpack.c.bf16 %v1391_v61, %v1390_v60  ;;  %v2231_v60 = vld [vmem:[%s4021_s19 + $0x40] sm:$0xff]  ;;  %v2232_v61 = vld [vmem:[%s4021_s19 + $0x48] sm:$0xff] }
 0x326   : > { %v2988_v62 = vpack.c.bf16 %v2232_v61, %v2231_v60 }
 0x327   : > { %2815 = vmatpush3.bf16.msra.mxu0 %v1406_v1  ;;  %2827 = vmatpush3.bf16.msra.mxu1 %v1406_v1 }
 0x328   : > { %2820 = vmatprep.subr.bf16.mxu0 %v3284_v6  ;;  %2868 = vmatprep.subr.bf16.mxu1 %v3284_v6 }
 0x32a   : > { %2817 = vmatmul.mubr.msk.bf16.vlgmr.msra.gmra.mrb[8].mxu0 %vm1407_vm9, %v1397_v20  ;;  %2829 = vmatmul.mubr.msk.bf16.vlgmr.msra.gmra.mrb[8].mxu1 %vm1407_vm9, %v1405_v2 }
 0x32b   : > { %2821 = vmatpush3.bf16.msra.mxu0 %v1406_v1  ;;  %2822 = vmatprep.mubr.msk.bf16.mxu0 %vm3285_vm1, %v3284_v6  ;;  %v2991_v1 = vpack.c.bf16 %v2234_v0, %v2233_v63 }
 0x32c   : > { %2832 = vmatprep.subr.bf16.mxu0 %v3284_v6  ;;  %2869 = vmatpush3.bf16.msra.mxu1 %v3114_v41 }
 0x32d   : > { %2870 = vmatprep.subr.bf16.mxu1 %v3284_v6  ;;  %2876 = vmatprep.mubr.msk.bf16.mxu1 %vm3285_vm1, %v3284_v6 }
 0x330   : > { %2871 = vmatpush3.bf16.msra.mxu1 %v3116_v3  ;;  %v2546_v3 = vld [vmem:[%s4013_s11] ss:$0 sm:$0xff] }
 0x331   : > { %2872 = vmatprep.subr.bf16.mxu1 %v3284_v6 }
 0x332   : > { %2823 = vmatmul.mubr.msk.bf16.vlgmr.msra.gmra.mrb[12].mxu0 %vm1407_vm9, %v1401_v4 }
 0x333   : > { %2833 = vmatpush3.bf16.msra.mxu0 %v3113_v5  ;;  %2840 = vmatprep.mubr.msk.bf16.mxu0 %vm3285_vm1, %v3284_v6  ;;  %v2547_v5 = vld [vmem:[%s4014_s12] ss:$0 sm:$0xff] }
 0x334   : > { %2834 = vmatprep.subr.bf16.mxu0 %v3284_v6  ;;  %2873 = vmatpush3.bf16.msra.mxu1 %v3118_v7 }
 0x335   : > { %2874 = vmatprep.subr.bf16.mxu1 %v3284_v6 }
 0x337   : > { %2835 = vmatpush3.bf16.msra.mxu0 %v3115_v8 }
 0x338   : > { %2836 = vmatprep.subr.bf16.mxu0 %v3284_v6  ;;  %2875 = vmatpush3.bf16.msra.mxu1 %v3120_v11 }
 0x339   : > { %2880 = vmatprep.subr.bf16.mxu1 %v3284_v6 }
 0x33b   : > { %2837 = vmatpush3.bf16.msra.mxu0 %v3117_v9 }
 0x33c   : > { %2838 = vmatprep.subr.bf16.mxu0 %v3284_v6 }
 0x33f   : > { %2839 = vmatpush3.bf16.msra.mxu0 %v3119_v10 }
 0x340   : > { %2844 = vmatprep.subr.bf16.mxu0 %v3284_v6 }
 0x3fd   : > { %v1445_v12 = vpop.f32.mrb[8].mxu0  ;;  %v1533_v14 = vpop.f32.mrb[8].mxu1 }
 0x3fe   : > { %v1451_v15 = vpack.c.bf16 %v1445_v12, %v1445_v12  ;;  %v2818_v16 = vpop.f32.mrb[9].mxu0  ;;  %v2830_v17 = vpop.f32.mrb[9].mxu1  ;;  %v1539_v31 = vpack.c.bf16 %v1533_v14, %v1533_v14 }
 0x3ff   : > { %v1448_v18 = vpop.f32.mrb[10].mxu0  ;;  %v1536_v19 = vpop.f32.mrb[10].mxu1  ;;  %v3139_v16 = vld [vmem:[%s4018_s16 + $0x10] sm:$0xff]   ;;  %v3140_v17 = vld [vmem:[%s4018_s16 + $0x18] sm:$0xff]  }
 0x400   : > { %2841 = vmatmul.mubr.msk.bf16.vlgmr.msra.gmra.mrb[16].mxu0 %vm903_vm4, %v1451_v15  ;;  %v2819_v21 = vpop.f32.mrb[11].mxu0  ;;  %2877 = vmatmul.mubr.msk.bf16.vlgmr.msra.gmra.mrb[12].mxu1 %vm903_vm4, %v1451_v15  ;;  %v2831_v22 = vpop.f32.mrb[11].mxu1  ;;  %v3138_v15 = vld [vmem:[%s4018_s16 + $0x8] sm:$0xff]   ;;  %v3141_v18 = vld [vmem:[%s4018_s16 + $0x20] sm:$0xff]  }
 0x401   : > { %2845 = vmatpush3.bf16.msra.mxu0 %v3121_v13  ;;  %2852 = vmatprep.mubr.msk.bf16.mxu0 %vm3285_vm1, %v3284_v6  ;;  %v3137_v13 = vld [vmem:[%s4018_s16] sm:$0xff]   ;;  %v3142_v19 = vld [vmem:[%s4018_s16 + $0x28] sm:$0xff]   ;;  %v3143_v21 = vld [vmem:[%s4018_s16 + $0x30] sm:$0xff]  }
 0x402   : > { %2846 = vmatprep.subr.bf16.mxu0 %v3284_v6  ;;  %2896 = vmatprep.mubr.msk.bf16.mxu1 %vm3285_vm1, %v3284_v6  ;;  %v3144_v22 = vld [vmem:[%s4018_s16 + $0x38] sm:$0xff]  }
 0x403   : > { %2881 = vmatpush3.bf16.msra.mxu1 %v3129_v37  ;;  %v2236_v37 = vld [vmem:[%s4021_s19 + $0x68] sm:$0xff] }
 0x404   : > { %2882 = vmatprep.subr.bf16.mxu1 %v3284_v6 }
 0x405   : > { %2847 = vmatpush3.bf16.msra.mxu0 %v3122_v23  ;;  %v1489_v25 = vpop.f32.mrb[12].mxu0 }
 0x406   : > { %2848 = vmatprep.subr.bf16.mxu0 %v3284_v6  ;;  %v2824_v26 = vpop.f32.mrb[13].mxu0  ;;  %v1495_v36 = vpack.c.bf16 %v1489_v25, %v1489_v25 }
 0x407   : > { %v1492_v27 = vpop.f32.mrb[14].mxu0  ;;  %2883 = vmatpush3.bf16.msra.mxu1 %v3130_v38  ;;  %v3146_v26 = vld [vmem:[%s4018_s16 + $0x88] sm:$0xff]  }
 0x408   : > { %v2825_v29 = vpop.f32.mrb[15].mxu0  ;;  %2884 = vmatprep.subr.bf16.mxu1 %v3284_v6  ;;  %v3147_v27 = vld [vmem:[%s4018_s16 + $0x90] sm:$0xff]  }
 0x409   : > { %2849 = vmatpush3.bf16.msra.mxu0 %v3123_v24  ;;  %v3145_v24 = vld [vmem:[%s4018_s16 + $0x80] sm:$0xff]   ;;  %v3148_v29 = vld [vmem:[%s4018_s16 + $0x98] sm:$0xff]  }
 0x40a   : > { %2850 = vmatprep.subr.bf16.mxu0 %v3284_v6 }
 0x40b   : > { %2885 = vmatpush3.bf16.msra.mxu1 %v3131_v39 }
 0x40c   : > { %2886 = vmatprep.subr.bf16.mxu1 %v3284_v6 }
 0x40d   : > { %2851 = vmatpush3.bf16.msra.mxu0 %v3124_v30  ;;  %v3149_v30 = vld [vmem:[%s4018_s16 + $0xa0] sm:$0xff]  }
 0x40e   : > { %2856 = vmatprep.subr.bf16.mxu0 %v3284_v6 }
 0x40f   : > { %2887 = vmatpush3.bf16.msra.mxu1 %v3132_v40  ;;  %v2553_v40 = vld [vmem:[%s4016_s14] ss:$0 sm:$0xff] }
 0x410   : > { %2853 = vmatmul.mubr.msk.bf16.vlgmr.msra.gmra.mrb[16].mxu0 %vm903_vm4, %v1539_v31  ;;  %2888 = vmatprep.subr.bf16.mxu1 %v3284_v6  ;;  %v3150_v31 = vld [vmem:[%s4018_s16 + $0xa8] sm:$0xff]  }
 0x411   : > { %2857 = vmatpush3.bf16.msra.mxu0 %v3125_v32  ;;  %2864 = vmatprep.mubr.msk.bf16.mxu0 %vm3285_vm1, %v3284_v6  ;;  %v3151_v32 = vld [vmem:[%s4018_s16 + $0xb0] sm:$0xff]  }
 0x412   : > { %2858 = vmatprep.subr.bf16.mxu0 %v3284_v6 }
 0x413   : > { %2889 = vmatpush3.bf16.msra.mxu1 %v3133_v43  ;;  %v2621_v43 = vld [vmem:[%s4019_s17] ss:$0 sm:$0xff] }
 0x414   : > { %2890 = vmatprep.subr.bf16.mxu1 %v3284_v6 }
 0x415   : > { %2859 = vmatpush3.bf16.msra.mxu0 %v3126_v33  ;;  %v3152_v33 = vld [vmem:[%s4018_s16 + $0xb8] sm:$0xff]  }
 0x416   : > { %2860 = vmatprep.subr.bf16.mxu0 %v3284_v6 }
 0x417   : > { %2891 = vmatpush3.bf16.msra.mxu1 %v3134_v44 }
 0x418   : > { %2892 = vmatprep.subr.bf16.mxu1 %v3284_v6 }
 0x419   : > { %2861 = vmatpush3.bf16.msra.mxu0 %v3127_v34 }
 0x41a   : > { %2862 = vmatprep.subr.bf16.mxu0 %v3284_v6 }
 0x41b   : > { %2893 = vmatpush3.bf16.msra.mxu1 %v3135_v45  ;;  %v2554_v45 = vld [vmem:[%s4017_s15] ss:$0 sm:$0xff] }
 0x41c   : > { %2894 = vmatprep.subr.bf16.mxu1 %v3284_v6 }
 0x41d   : > { %2863 = vmatpush3.bf16.msra.mxu0 %v3128_v35 }
 0x41e   : > { %2975 = vmatprep.subr.bf16.mxu0 %v3286_v50 }
 0x41f   : > { %2895 = vmatpush3.bf16.msra.mxu1 %v3136_v46  ;;  %v2622_v46 = vld [vmem:[%s4020_s18] ss:$0 sm:$0xff] }
 0x420   : > { %2865 = vmatmul.mubr.msk.bf16.vlgmr.msra.gmra.mrb[16].mxu0 %vm903_vm4, %v1495_v36  ;;  %2900 = vmatprep.subr.bf16.mxu1 %v3284_v6  ;;  %v2235_v36 = vld [vmem:[%s4021_s19 + $0x60] sm:$0xff] }
 0x421   : > { %2972 = vmatprep.mubr.msk.f32.mxu0 %vm3285_vm1, %v3284_v6  ;;  %2977 = vmatpush3.bf16.msra.mxu0 %v2976_v51  ;;  %v2994_v38 = vpack.c.bf16 %v2236_v37, %v2235_v36 }
 0x422   : > { %2978 = vmatprep.subr.bf16.mxu0 %v3286_v50 }
 0x425   : > { %2980 = vmatpush3.bf16.msra.mxu0 %v2979_v53 }
 0x426   : > { %2981 = vmatprep.subr.bf16.mxu0 %v3286_v50 }
 0x429   : > { %2983 = vmatpush3.bf16.msra.mxu0 %v2982_v56 }
 0x42a   : > { %2984 = vmatprep.subr.bf16.mxu0 %v3286_v50 }
 0x42d   : > { %2986 = vmatpush3.bf16.msra.mxu0 %v2985_v59 }
 0x42e   : > { %2987 = vmatprep.subr.bf16.mxu0 %v3286_v50 }
 0x431   : > { %2989 = vmatpush3.bf16.msra.mxu0 %v2988_v62 }
 0x432   : > { %2990 = vmatprep.subr.bf16.mxu0 %v3286_v50 }
 0x435   : > { %2992 = vmatpush3.bf16.msra.mxu0 %v2991_v1 }
 0x436   : > { %2993 = vmatprep.subr.bf16.mxu0 %v3286_v50 }
 0x439   : > { %2995 = vmatpush3.bf16.msra.mxu0 %v2994_v38 }
 0x43a   : > { %2996 = vmatprep.subr.bf16.mxu0 %v3286_v50 }
 0x4d3   : > { %v3815_v20 = vpop.f32.mrb[12].mxu1 }
 0x4d4   : > { %v2878_v2 = vpop.f32.mrb[13].mxu1  ;;  %v1864_v44 = vmul.f32 %v2553_v40, %v3815_v20 }
 0x4d5   : > { %v1854_v41 = vpop.f32.mrb[14].mxu1 }
 0x4d6   : > { %v2879_v42 = vpop.f32.mrb[15].mxu1  ;;  %v1872_v51 = vadd.f32 %v2554_v45, %v1864_v44 }
 0x4f3   : > { %v1761_v4 = vpop.f32.mrb[16].mxu0 }
 0x4f4   : > { %v1775_v7 = vmul.f32 %v2546_v3, %v1761_v4  ;;  %v2866_v8 = vpop.f32.mrb[17].mxu0 }
 0x4f5   : > { %v1764_v9 = vpop.f32.mrb[18].mxu0 }
 0x4f6   : > { %v1783_v10 = vadd.f32 %v2547_v5, %v1775_v7  ;;  %v2867_v11 = vpop.f32.mrb[19].mxu0 }
 0x4f8   : > { %v1784_v12 = vmax.f32 %v1783_v10, 0.0 }
 0x4fa   : > { %v1894_v14 = vpack.c.bf16 %v1784_v12, %v1784_v12  ;;  %v1875_v23 = vrot.slane %v1784_v12, 7  ;;  %v2088_v34 = vrot.slane %v1784_v12, 1 }
 0x4fc   : > { %2897 = vmatmul.mubr.bf16.vlgmr.msra.gmra.mrb[16].mxu1 %v1894_v14  ;;  %v2590_v25 = vpack.c.bf16 %v1875_v23, %v1875_v23  ;;  %v2619_v35 = vpack.c.bf16 %v2088_v34, %v2088_v34 }
 0x4fd   : > { %2901 = vmatpush3.bf16.msra.mxu1 %v3137_v13  ;;  %2916 = vmatprep.mubr.msk.bf16.mxu1 %vm3285_vm1, %v3284_v6 }
 0x4fe   : > { %2902 = vmatprep.subr.bf16.mxu1 %v3284_v6 }
 0x501   : > { %2903 = vmatpush3.bf16.msra.mxu1 %v3138_v15 }
 0x502   : > { %2904 = vmatprep.subr.bf16.mxu1 %v3284_v6 }
 0x505   : > { %2905 = vmatpush3.bf16.msra.mxu1 %v3139_v16 }
 0x506   : > { %2906 = vmatprep.subr.bf16.mxu1 %v3284_v6 }
 0x509   : > { %2907 = vmatpush3.bf16.msra.mxu1 %v3140_v17 }
 0x50a   : > { %2908 = vmatprep.subr.bf16.mxu1 %v3284_v6 }
 0x50d   : > { %2909 = vmatpush3.bf16.msra.mxu1 %v3141_v18 }
 0x50e   : > { %2910 = vmatprep.subr.bf16.mxu1 %v3284_v6 }
 0x511   : > { %2911 = vmatpush3.bf16.msra.mxu1 %v3142_v19 }
 0x512   : > { %2912 = vmatprep.subr.bf16.mxu1 %v3284_v6 }
 0x515   : > { %2913 = vmatpush3.bf16.msra.mxu1 %v3143_v21 }
 0x516   : > { %2914 = vmatprep.subr.bf16.mxu1 %v3284_v6 }
 0x519   : > { %2915 = vmatpush3.bf16.msra.mxu1 %v3144_v22 }
 0x51a   : > { %2920 = vmatprep.subr.bf16.mxu1 %v3284_v6 }
 0x51c   : > { %2917 = vmatmul.mubr.msk.bf16.vlgmr.msra.gmra.mrb[16].mxu1 %vm2589_vm12, %v2590_v25 }
 0x51d   : > { %2921 = vmatpush3.bf16.msra.mxu1 %v3145_v24  ;;  %2936 = vmatprep.mubr.msk.bf16.mxu1 %vm3285_vm1, %v3284_v6 }
 0x51e   : > { %2922 = vmatprep.subr.bf16.mxu1 %v3284_v6 }
 0x521   : > { %2923 = vmatpush3.bf16.msra.mxu1 %v3146_v26 }
 0x522   : > { %2924 = vmatprep.subr.bf16.mxu1 %v3284_v6 }
 0x525   : > { %2925 = vmatpush3.bf16.msra.mxu1 %v3147_v27 }
 0x526   : > { %2926 = vmatprep.subr.bf16.mxu1 %v3284_v6 }
 0x529   : > { %2927 = vmatpush3.bf16.msra.mxu1 %v3148_v29 }
 0x52a   : > { %2928 = vmatprep.subr.bf16.mxu1 %v3284_v6 }
 0x52d   : > { %2929 = vmatpush3.bf16.msra.mxu1 %v3149_v30 }
 0x52e   : > { %2930 = vmatprep.subr.bf16.mxu1 %v3284_v6 }
 0x531   : > { %2931 = vmatpush3.bf16.msra.mxu1 %v3150_v31 }
 0x532   : > { %2932 = vmatprep.subr.bf16.mxu1 %v3284_v6 }
 0x535   : > { %2933 = vmatpush3.bf16.msra.mxu1 %v3151_v32 }
 0x536   : > { %2934 = vmatprep.subr.bf16.mxu1 %v3284_v6  ;;  %v2237_v6 = vld [vmem:[%s4021_s19 + $0x70] sm:$0xff] }
 0x537   : > { %v2997_v39 = vpack.c.bf16 %v2238_v28, %v2237_v6 }
 0x539   : > { %2935 = vmatpush3.bf16.msra.mxu1 %v3152_v33  ;;  %2998 = vmatpush3.bf16.msra.mxu0 %v2997_v39 }
 0x53c   : > { %2937 = vmatmul.mubr.msk.bf16.vlgmr.msra.gmra.mrb[16].mxu1 %vm2618_vm14, %v2619_v35 }
 0x60f   : > { %v2191_v47 = vpop.f32.mrb[16].mxu1 }
 0x610   : > { %v2204_v48 = vmul.f32 %v2621_v43, %v2191_v47  ;;  %v2938_v49 = vpop.f32.mrb[17].mxu1 }
 0x611   : > { %v2194_v50 = vpop.f32.mrb[18].mxu1 }
 0x612   : > { %v2211_v52 = vadd.f32 %v2622_v46, %v2204_v48  ;;  %v2939_v53 = vpop.f32.mrb[19].mxu1 }
 0x614   : > { %v2212_v54 = vadd.f32 %v2211_v52, %v1872_v51 }
 0x616   : > { %v2213_v55 = vmax.f32 %v2212_v54, 0.0 }
 0x618   : > { %v2214_v56 = vrot.slane %v2213_v55, 4  ;;  %2973 = vmatmul.mubr.f32.vlgmr.msra.gmra.mrb[20].mxu0 %v2213_v55 }
 0x61a   : > { %v2215_v57 = vadd.f32 %v2214_v56, %v2213_v55 }
 0x61c   : > { %v2216_v58 = vrot.slane %v2215_v57, 2 }
 0x61e   : > { %v2217_v59 = vadd.f32 %v2216_v58, %v2215_v57 }
 0x620   : > { %v2218_v60 = vrot.slane %v2217_v59, 1 }
 0x622   : > { %v2219_v61 = vadd.f32 %v2218_v60, %v2217_v59 }
 0x624   : > { %v2221_v62 = vmul.f32 0.125, %v2219_v61 }
 0x626   : > { %2222 = vst [vmem:[%s700_s23] sm:$0x1] %v2221_v62 }
 0x627   : > { %3194 = shalt.err (!%p3191_p7)
}
 0x628   : > { %s3195_s23 = scalar_lea.hbm %s3930_s30, 16  ;;  %s3199_s27 = scalar_lea.hbm %s4024_s22, 32 }
 0x629   : > { %p3196_p8 = scmp.ne.s32.totalorder %s3930_s30, %s3195_s23  ;;  %p3200_p1 = scmp.lt.u32.totalorder %s3930_s30, %s4024_s22 }
 0x62a   : > { %p3201_p0 = scmp.lt.u32.totalorder %s3199_s27, %s3195_s23  ;;  %p3203_p6 = scmp.lt.u32.totalorder %s3195_s23, %s3930_s30 }
 0x62b   : > { %p3197_p11 = pnand %p3196_p8, %p4064_p9 }
 0x62c   : > { %p3202_p5 = por %p3201_p0, %p3200_p1 }
 0x62d   : > { %p3198_p13 = pneg %p3197_p11 }
 0x62e   : > { %p3204_p10 = por %p3203_p6, %p3202_p5 }
 0x630   : > { %p3205_p12 = pnand %p3204_p10, %p3198_p13 }
 0x632   : > { %3208 = shalt.err (!%p3205_p12)
}
 0x633   : > { %3034 = dma.vmem_to_hbm [thread:$0]  (%p4064_p9), %s2353_s25, 16, %s3930_s30, %s2327_s0   ;;  %vm2309_vm15 = vcmask 80896   ;;  %v2318_v5 = vld [vmem:[%s4022_s20] sm:$0x1]  ;;  %vm2320_vm0 = vcmask 73728  }
 0x634   : > { %s694_s2 = scalar_lea.vmem [#allocation5], %s3921_s26  ;;  %s4065_s30 = sshll.u32 %s3425_s4, 4 }
 0x635   : > { %s2339_s23 = sshll.u32 %s694_s2, 4  ;;  %s3959_s3 = scalar_lea.hbm %s4023_s21, %s4065_s30  ;;  %s3961_s23 = int_to_ptr.vmem [resolvable:$true] %s2339_s23 }
 0x636   : > { %s2323_s24 = scalar_lea.sflag [#allocation4], %s3921_s26  ;;  %s3209_s27 = scalar_lea.vmem %s3961_s23, 16 }
 0x637   : > { %p3210_p2 = scmp.ne.s32.totalorder %s3961_s23, %s3209_s27  ;;  %s3288_s29 = smov [#allocation5]  }
 0x638   : > { %s3213_s5 = sshll.u32 %s3288_s29, 4  ;;  %s3214_s5 = int_to_ptr.vmem [resolvable:$false] %s3213_s5 }
 0x639   : > { %p3211_p3 = pnand %p3210_p2, %p4064_p9  ;;  %s3215_s4 = scalar_lea.vmem %s3214_s5, 32 }
 0x63a   : > { %p3216_p7 = scmp.lt.s32.totalorder %s3961_s23, %s3214_s5  ;;  %p3217_p8 = scmp.lt.s32.totalorder %s3215_s4, %s3209_s27 }
 0x63b   : > { %p3212_p4 = pneg %p3211_p3 }
 0x63c   : > { %p3218_p11 = por %p3217_p8, %p3216_p7 }
 0x63e   : > { %p3219_p13 = pnand %p3218_p11, %p3212_p4 }
 0x6eb   : > { %v2305_v63 = vpop.f32.mrb[20].mxu0 }
 0x6ec   : > { %v2310_v0 = vsel %vm2309_vm15, %v2305_v63, 0.0  ;;  %v2974_v1 = vpop.f32.mrb[21].mxu0 }
 0x6ed   : > { %v2311_v20 = vrot.slane %v2310_v0, 4 }
 0x6ef   : > { %v2312_v2 = vadd.f32 %v2311_v20, %v2310_v0 }
 0x6f1   : > { %v2313_v41 = vrot.slane %v2312_v2, 2 }
 0x6f3   : > { %v2314_v42 = vadd.f32 %v2313_v41, %v2312_v2 }
 0x6f5   : > { %v2315_v3 = vrot.slane %v2314_v42, 1 }
 0x6f7   : > { %v2316_v4 = vadd.f32 %v2315_v3, %v2314_v42 }
 0x6f9   : > { %v2317_v7 = vmul.f32 0.125, %v2316_v4 }
 0x6fb   : > { %v2319_v8 = vadd.f32 %v2318_v5, %v2317_v7 }
 0x6fd   : > { %2321 = vst.msk [vmem:[%s694_s2] sm:$0x1] %vm2320_vm0, %v2319_v8 }
 0x6fe   : > { %3222 = shalt.err (!%p3219_p13)
}
 0x6ff   : > { %s3223_s26 = scalar_lea.hbm %s3959_s3, 16  ;;  %s3227_s30 = scalar_lea.hbm %s4023_s21, 32 }
 0x700   : > { %p3224_p1 = scmp.ne.s32.totalorder %s3959_s3, %s3223_s26  ;;  %p3228_p6 = scmp.lt.u32.totalorder %s3959_s3, %s4023_s21 }
 0x701   : > { %p3229_p10 = scmp.lt.u32.totalorder %s3227_s30, %s3223_s26  ;;  %p3231_p2 = scmp.lt.u32.totalorder %s3223_s26, %s3959_s3 }
 0x702   : > { %p3225_p0 = pnand %p3224_p1, %p4064_p9 }
 0x703   : > { %p3230_p12 = por %p3229_p10, %p3228_p6 }
 0x704   : > { %p3226_p5 = pneg %p3225_p0 }
 0x705   : > { %p3232_p3 = por %p3231_p2, %p3230_p12 }
 0x707   : > { %p3233_p4 = pnand %p3232_p3, %p3226_p5 }
 0x709   : > { %3236 = shalt.err (!%p3233_p4)
}
 0x70a   : > { %3033 = dma.vmem_to_hbm [thread:$0]  (%p4064_p9), %s3961_s23, 16, %s3959_s3, %s2323_s24  }
 0x70b PF: > { %s4066_s27 = sld [smem:[#allocation13_spill]]  ;;  %s4067_s29 = sld [smem:[#allocation11_spill]] }
 0x70c   : > { %s4068_s5 = sld [smem:[#allocation16_spill]] }
 0x711   : > { %p3050_p7 = scmp.ge.s32.totalorder %s4066_s27, 2  ;;  %s2364_s4 = sand.u32 1, %s4067_s29  }
 0x712   : > { %p4069_p8 = scmp.ne.s32.totalorder %s4068_s5, 0  ;;  %s2365_s1 = scalar_lea.sflag [#allocation4], %s2364_s4 }
 0x714   : > { %p3042_p11 = pnand %p3050_p7, %p4069_p8 }
 0x716   : > { %3258 = dma.done.wait (!%p3042_p11), %s2365_s1, 16  }
 0x717   : > { %3260 = vsyncadd (!%p3042_p11), %s2365_s1, 4294967280  ;;  %s2373_s26 = scalar_lea.sflag [#allocation7], %s2364_s4 }
 0x718   : > { %3262 = dma.done.wait (!%p3042_p11), %s2373_s26, 16  }
 0x719   : > { %3264 = vsyncadd (!%p3042_p11), %s2373_s26, 4294967280  ;;  %s4070_s30 = sld [smem:[#allocation14_spill]]  ;;  %s4071_s6 = sld [smem:[#allocation12_spill]] }
 0x71a   : > { %s4072_s29 = sld [smem:[#allocation15_spill]]  ;;  %s4073_s3 = smov %s3271_s28 }
 0x71f   : > { %p37_p9 = scmp.ge.s32.totalorder %s4070_s30, 4   ;;  %s4074_s28 = smov %s4071_s6 }
 0x721   :  { %39 = sbr.rel (!%p37_p9) target bundleno = 14 (0xe), region = 169 }
 0x728   :  { %2377 = vsyncpa [#allocation3], 1 }
 0x729   :  { %2379 = vsyncpa [#allocation3 + $0x1], 1 }
 0x72a   :  { %2380 = vsyncpa [#allocation4], 1 }
 0x72b   :  { %2382 = vsyncpa [#allocation4 + $0x1], 1 }
 0x72c   :  { %2383 = vsyncpa [#allocation7], 1 }
 0x72d   :  { %2385 = vsyncpa [#allocation7 + $0x1], 1 }

</bundles_post_ra>
